<compile_context>
chip_gen: v7x
topology: tpu7x:2x2x1
jax: 0.10.0
libtpu: 0.0.40
codegen_flags: <defaults>
</compile_context>

<pallas_src>
import jax
import jax.numpy as jnp
from jax.experimental import pallas as pl
from jax.experimental.pallas import tpu as pltpu

LANE = 128


def _round_up(v, m):
    return (v + m - 1) // m * m


def _vmem_limit_bytes():
    """Generation-aware VMEM limit (v7x: 64 MiB physical; v5e/v6e: 128 MiB)."""
    try:
        cap = int(pltpu.get_tpu_info().vmem_capacity_bytes)
    except Exception:  # pragma: no cover - conservative (v7x-sized) fallback
        cap = 64 << 20
    return min(cap - (8 << 20), 100 << 20)


def _choose_bt(b_graphs, n, f, tile_budget_bytes):
    """Graphs per grid step: VMEM-budgeted, MXU-row aligned, grid >= 2 when possible."""
    # Per-graph per-step bytes: double-buffered inputs (dad bf16, x bf16, r f32)
    # plus the f32 lane-padded output tile.
    per_graph = 2 * (n * n * 2 + n * f * 2 + n * 4) + 2 * LANE * 4
    bt_cap = max(8, int(tile_budget_bytes // max(per_graph, 1)))

    # Alignment: BT multiple of 8 (sublanes); prefer BT*N multiple of 256 (v6e/v7x MXU rows).
    align = max(8, 256 // n) if (n <= 256 and 256 % n == 0) else 8

    bt = min(b_graphs, bt_cap)
    bt = max(align, (bt // align) * align)

    # Guarantee >= 2 grid steps whenever the batch allows (v7x megacore + pipelining).
    while bt > align and _round_up(b_graphs, bt) // bt < 2:
        bt = max(align, ((bt // 2) // align) * align)
    return bt


def gcn_kernel(dad_ref, x_ref, r_ref, w1_ref, b1_ref, w2_ref, b2_ref, out_ref):
    """Fused 2-layer GCN + mean_nodes for a block of BT graphs.

    Block shapes:
      dad_ref : [BT, N, N]  bf16   normalized adjacency D^-1/2 A D^-1/2
      x_ref   : [BT, N, F]  bf16   node features
      r_ref   : [BT, N]     f32    (1/N) * column sums of A_hat (precomputed in f32)
      w1_ref  : [F, H]      bf16
      b1_ref  : [1, H]      f32
      w2_ref  : [H, Cp]     bf16   (Cp = num_classes padded to a lane multiple)
      b2_ref  : [1, Cp]     f32
      out_ref : [BT, Cp]    f32    (lane-dense, unmasked store)
    """
    dad = dad_ref[...]                                           # [BT, N, N] bf16
    x = x_ref[...]                                               # [BT, N, F] bf16

    # ---- layer 1, aggregate-first (F < H): H1 = relu((A_hat @ X) @ W1 + b1) ----
    ax = jnp.einsum('bij,bjf->bif', dad, x,
                    preferred_element_type=jnp.float32)          # [BT, N, F] f32
    h1 = jnp.einsum('bif,fh->bih', ax.astype(jnp.bfloat16), w1_ref[...],
                    preferred_element_type=jnp.float32)          # [BT, N, H] f32
    h1 = jnp.maximum(h1 + b1_ref[...], 0.0)                      # bias + ReLU in f32

    # ---- fused layer-2 aggregation + mean_nodes ----
    #   mean_i H2[i, :] = (r @ H1) @ W2 + b2,   r = (1/N) * 1^T A_hat  (precomputed f32)
    # VPU weighted sum in f32 (avoids an M=1 MXU matmul and extra bf16 packs).
    pooled = jnp.sum(r_ref[...][..., None] * h1, axis=1)         # [BT, H] f32

    out = jnp.dot(pooled.astype(jnp.bfloat16), w2_ref[...],
                  preferred_element_type=jnp.float32) + b2_ref[...]   # [BT, Cp] f32
    out_ref[...] = out.astype(out_ref.dtype)


def gcn_forward(dad, x, w1, b1, w2, b2):
    """dad: [B, N, N] f32, x: [B, N, F] f32, w1: [F, H], b1: [H], w2: [H, C], b2: [C]
    -> [B, C] f32 (mean-pooled class scores per graph)."""
    b_graphs, n, _ = dad.shape
    f = x.shape[-1]
    h = w1.shape[1]
    c = w2.shape[1]
    cp = _round_up(c, LANE)

    vmem_limit = _vmem_limit_bytes()
    bt = _choose_bt(b_graphs, n, f, tile_budget_bytes=vmem_limit - (8 << 20))
    b_pad = _round_up(b_graphs, bt)
    grid = (b_pad // bt,)

    # Pad the batch so every grid step is full (padded graphs are all-zero -> zero rows).
    if b_pad != b_graphs:
        pad = b_pad - b_graphs
        dad = jnp.pad(dad, ((0, pad), (0, 0), (0, 0)))
        x = jnp.pad(x, ((0, pad), (0, 0), (0, 0)))

    # r = (1/N) * column sums of A_hat, taken from the f32 adjacency (better numerics,
    # no f32 materialization of the dad tile inside the kernel).
    r = (jnp.sum(dad, axis=1) * (1.0 / n)).astype(jnp.float32)       # [B_pad, N]

    # bf16 MXU operands; lane-pad the class dimension; biases stay f32.
    dad_bf = dad.astype(jnp.bfloat16)
    x_bf = x.astype(jnp.bfloat16)
    w1_bf = w1.astype(jnp.bfloat16)
    w2_bf = jnp.pad(w2.astype(jnp.bfloat16), ((0, 0), (0, cp - c)))
    b1_2d = b1.reshape(1, h).astype(jnp.float32)
    b2_p = jnp.pad(b2.reshape(1, c).astype(jnp.float32), ((0, 0), (0, cp - c)))

    out_padded = pl.pallas_call(
        gcn_kernel,
        out_shape=jax.ShapeDtypeStruct((b_pad, cp), jnp.float32),
        grid_spec=pltpu.PrefetchScalarGridSpec(
            num_scalar_prefetch=0,
            grid=grid,
            in_specs=[
                pl.BlockSpec((bt, n, n), lambda g: (g, 0, 0)),   # A_hat tile (per-graph)
                pl.BlockSpec((bt, n, f), lambda g: (g, 0, 0)),   # X tile (3-D, no reshape)
                pl.BlockSpec((bt, n), lambda g: (g, 0)),         # r (f32, tiny)
                pl.BlockSpec((f, h), lambda g: (0, 0)),          # W1 (resident)
                pl.BlockSpec((1, h), lambda g: (0, 0)),          # b1
                pl.BlockSpec((h, cp), lambda g: (0, 0)),         # W2 (lane-padded)
                pl.BlockSpec((1, cp), lambda g: (0, 0)),         # b2 (lane-padded)
            ],
            out_specs=pl.BlockSpec((bt, cp), lambda g: (g, 0)),  # lane-dense output
        ),
        compiler_params=pltpu.CompilerParams(
            dimension_semantics=("parallel",),                   # graph tiles independent
            vmem_limit_bytes=vmem_limit,
        ),
    )(dad_bf, x_bf, r, w1_bf, b1_2d, w2_bf, b2_p)

    return out_padded[:b_graphs, :c]
    # TODO(synk): add a node-tiled (N-block) grid axis with an accumulator for graphs
    # whose [N, N] adjacency does not fit a single VMEM tile (N >~ 4k).


def build_normalized_adjacency(key, num_graphs, n_nodes):
    """Deterministic random symmetric graphs -> dense D^{-1/2} A D^{-1/2} per graph."""
    a = (jax.random.uniform(key, (num_graphs, n_nodes, n_nodes)) < 0.3).astype(jnp.float32)
    a = jnp.maximum(a, jnp.swapaxes(a, -1, -2))            # symmetrize (undirected)
    a = a * (1.0 - jnp.eye(n_nodes))                       # no self loops
    deg = jnp.sum(a, axis=-1)
    d_inv_sqrt = jnp.where(deg > 0, 1.0 / jnp.sqrt(jnp.maximum(deg, 1e-12)), 0.0)
    # allow_zero_in_degree=True: zero-degree rows simply get zero norm.
    return a * d_inv_sqrt[..., :, None] * d_inv_sqrt[..., None, :]


if __name__ == "__main__":
    # Small shapes consistent with the module's forward; a batch of graphs per call.
    B_GRAPHS = 64
    N_NODES = 16
    IN_FEATS = 8
    H_FEATS = 32
    NUM_CLASSES = 8

    key = jax.random.PRNGKey(0)
    k_adj, k_x, k_w1, k_w2 = jax.random.split(key, 4)

    dad = build_normalized_adjacency(k_adj, B_GRAPHS, N_NODES)
    x = jax.random.normal(k_x, (B_GRAPHS, N_NODES, IN_FEATS), dtype=jnp.float32)

    # Deterministic (Glorot-ish) parameter init; biases start at zero like GraphConv.
    w1 = jax.random.normal(k_w1, (IN_FEATS, H_FEATS), dtype=jnp.float32) * (
        1.0 / jnp.sqrt(jnp.float32(IN_FEATS))
    )
    b1 = jnp.zeros((H_FEATS,), dtype=jnp.float32)
    w2 = jax.random.normal(k_w2, (H_FEATS, NUM_CLASSES), dtype=jnp.float32) * (
        1.0 / jnp.sqrt(jnp.float32(H_FEATS))
    )
    b2 = jnp.zeros((NUM_CLASSES,), dtype=jnp.float32)

    run = jax.jit(gcn_forward)
    out = jax.block_until_ready(run(dad, x, w1, b1, w2, b2))

    # Pure-JAX f32 reference of the unfused dense forward (module semantics).
    h1_ref = jnp.maximum(jnp.einsum('bij,bjh->bih', dad, x @ w1) + b1, 0.0)
    h2_ref = jnp.einsum('bij,bjh->bih', dad, h1_ref @ w2) + b2
    ref = jnp.mean(h2_ref, axis=1)                      # dgl.mean_nodes -> [B, C]

    assert out.shape == (B_GRAPHS, NUM_CLASSES)
    assert bool(jnp.allclose(out, ref, atol=3e-2, rtol=3e-2))

    print("KERNEL_OK")
</pallas_src>

<mosaic_0001>
module attributes {stable_mosaic.version = 11 : i64} {
  func.func @gcn_kernel(%arg0: i32, %arg1: memref<32x16x16xbf16, #tpu.memory_space<vmem>>, %arg2: memref<32x16x8xbf16, #tpu.memory_space<vmem>>, %arg3: memref<32x16xf32, #tpu.memory_space<vmem>>, %arg4: memref<8x32xbf16, #tpu.memory_space<vmem>>, %arg5: memref<1x32xf32, #tpu.memory_space<vmem>>, %arg6: memref<32x128xbf16, #tpu.memory_space<vmem>>, %arg7: memref<1x128xf32, #tpu.memory_space<vmem>>, %arg8: memref<32x128xf32, #tpu.memory_space<vmem>>) attributes {dimension_semantics = [#tpu.dimension_semantics<parallel>], iteration_bounds = array<i64: 2>, scalar_prefetch = 0 : i64, scratch_operands = 0 : i64, tpu.core_type = #tpu.core_type<tc>, window_params = [{transform_indices = @transform_0, window_bounds = array<i64: 32, 16, 16>}, {transform_indices = @transform_1, window_bounds = array<i64: 32, 16, 8>}, {transform_indices = @transform_2, window_bounds = array<i64: 32, 16>}, {pipeline_mode = #tpu.pipeline_mode<synchronous>, transform_indices = @transform_3, window_bounds = array<i64: 8, 32>}, {pipeline_mode = #tpu.pipeline_mode<synchronous>, transform_indices = @transform_4, window_bounds = array<i64: 1, 32>}, {pipeline_mode = #tpu.pipeline_mode<synchronous>, transform_indices = @transform_5, window_bounds = array<i64: 32, 128>}, {pipeline_mode = #tpu.pipeline_mode<synchronous>, transform_indices = @transform_6, window_bounds = array<i64: 1, 128>}, {transform_indices = @transform_7, window_bounds = array<i64: 32, 128>}]} {
    %c0 = arith.constant 0 : index
    %c0_0 = arith.constant 0 : index
    %c0_1 = arith.constant 0 : index
    %0 = vector.load %arg1[%c0, %c0_0, %c0_1] : memref<32x16x16xbf16, #tpu.memory_space<vmem>>, vector<32x16x16xbf16>
    %c0_2 = arith.constant 0 : index
    %c0_3 = arith.constant 0 : index
    %c0_4 = arith.constant 0 : index
    %1 = vector.load %arg2[%c0_2, %c0_3, %c0_4] : memref<32x16x8xbf16, #tpu.memory_space<vmem>>, vector<32x16x8xbf16>
    "tpu.trace_start"() <{level = 10 : i32, message = "bij,bjf->bif"}> : () -> ()
    %cst = arith.constant dense<0.000000e+00> : vector<32x16x8xf32>
    %2 = tpu.matmul %0, %1, %cst {dimension_numbers = #tpu.dot_dimension_numbers<[2], [1], [1], [2], [0, 0, 0, 1, 1, 2], [0], [0]>} : vector<32x16x16xbf16>, vector<32x16x8xbf16>, vector<32x16x8xf32> -> vector<32x16x8xf32>
    "tpu.trace_stop"() : () -> ()
    %3 = arith.truncf %2 : vector<32x16x8xf32> to vector<32x16x8xbf16>
    %c0_5 = arith.constant 0 : index
    %c0_6 = arith.constant 0 : index
    %4 = vector.load %arg4[%c0_5, %c0_6] : memref<8x32xbf16, #tpu.memory_space<vmem>>, vector<8x32xbf16>
    "tpu.trace_start"() <{level = 10 : i32, message = "bif,fh->bih"}> : () -> ()
    %cst_7 = arith.constant dense<0.000000e+00> : vector<32x16x32xf32>
    %5 = tpu.matmul %3, %4, %cst_7 {dimension_numbers = #tpu.dot_dimension_numbers<[2], [0], [0, 1], [1], [0, 0, 0, 1, 1, 1], [], []>} : vector<32x16x8xbf16>, vector<8x32xbf16>, vector<32x16x32xf32> -> vector<32x16x32xf32>
    "tpu.trace_stop"() : () -> ()
    %c0_8 = arith.constant 0 : index
    %c0_9 = arith.constant 0 : index
    %6 = vector.load %arg5[%c0_8, %c0_9] : memref<1x32xf32, #tpu.memory_space<vmem>>, vector<1x32xf32>
    %7 = vector.shape_cast %6 : vector<1x32xf32> to vector<1x1x32xf32>
    %8 = vector.broadcast %7 : vector<1x1x32xf32> to vector<32x16x32xf32>
    %9 = arith.addf %5, %8 : vector<32x16x32xf32>
    %cst_10 = arith.constant 0.000000e+00 : f32
    %10 = vector.broadcast %cst_10 : f32 to vector<32x16x32xf32>
    %11 = arith.maximumf %9, %10 : vector<32x16x32xf32>
    %c0_11 = arith.constant 0 : index
    %c0_12 = arith.constant 0 : index
    %12 = vector.load %arg3[%c0_11, %c0_12] : memref<32x16xf32, #tpu.memory_space<vmem>>, vector<32x16xf32>
    %13 = vector.shape_cast %12 : vector<32x16xf32> to vector<32x16x1xf32>
    %14 = vector.broadcast %13 : vector<32x16x1xf32> to vector<32x16x32xf32>
    %15 = arith.mulf %14, %11 : vector<32x16x32xf32>
    %cst_13 = arith.constant dense<0.000000e+00> : vector<32x32xf32>
    %16 = vector.multi_reduction <add>, %15, %cst_13 [1] : vector<32x16x32xf32> to vector<32x32xf32>
    %17 = arith.truncf %16 : vector<32x32xf32> to vector<32x32xbf16>
    %c0_14 = arith.constant 0 : index
    %c0_15 = arith.constant 0 : index
    %18 = vector.load %arg6[%c0_14, %c0_15] : memref<32x128xbf16, #tpu.memory_space<vmem>>, vector<32x128xbf16>
    %cst_16 = arith.constant dense<0.000000e+00> : vector<32x128xf32>
    %19 = tpu.matmul %17, %18, %cst_16 {dimension_numbers = #tpu.dot_dimension_numbers<[1], [0], [0], [1], [0, 0, 1, 1], [], []>} : vector<32x32xbf16>, vector<32x128xbf16>, vector<32x128xf32> -> vector<32x128xf32>
    %c0_17 = arith.constant 0 : index
    %c0_18 = arith.constant 0 : index
    %20 = vector.load %arg7[%c0_17, %c0_18] : memref<1x128xf32, #tpu.memory_space<vmem>>, vector<1x128xf32>
    %21 = vector.broadcast %20 : vector<1x128xf32> to vector<32x128xf32>
    %22 = arith.addf %19, %21 : vector<32x128xf32>
    %c0_19 = arith.constant 0 : index
    %c0_20 = arith.constant 0 : index
    %23 = vector.load %arg8[%c0_19, %c0_20] : memref<32x128xf32, #tpu.memory_space<vmem>>, vector<32x128xf32>
    tpu.vector_store %arg8[%c0_19, %c0_20], %22 {strides = array<i32>} : memref<32x128xf32, #tpu.memory_space<vmem>>, vector<32x128xf32>,
    return
  }
  func.func @transform_0(%arg0: i32) -> (i32, i32, i32) {
    %c0_i32 = arith.constant 0 : i32
    %c0_i32_0 = arith.constant 0 : i32
    %c0_i32_1 = arith.constant 0 : i32
    return %arg0, %c0_i32, %c0_i32_0 : i32, i32, i32
  }
  func.func @transform_1(%arg0: i32) -> (i32, i32, i32) {
    %c0_i32 = arith.constant 0 : i32
    %c0_i32_0 = arith.constant 0 : i32
    %c0_i32_1 = arith.constant 0 : i32
    return %arg0, %c0_i32, %c0_i32_0 : i32, i32, i32
  }
  func.func @transform_2(%arg0: i32) -> (i32, i32) {
    %c0_i32 = arith.constant 0 : i32
    %c0_i32_0 = arith.constant 0 : i32
    return %arg0, %c0_i32 : i32, i32
  }
  func.func @transform_3(%arg0: i32) -> (i32, i32) {
    %c0_i32 = arith.constant 0 : i32
    %c0_i32_0 = arith.constant 0 : i32
    %c0_i32_1 = arith.constant 0 : i32
    return %c0_i32, %c0_i32_0 : i32, i32
  }
  func.func @transform_4(%arg0: i32) -> (i32, i32) {
    %c0_i32 = arith.constant 0 : i32
    %c0_i32_0 = arith.constant 0 : i32
    %c0_i32_1 = arith.constant 0 : i32
    return %c0_i32, %c0_i32_0 : i32, i32
  }
  func.func @transform_5(%arg0: i32) -> (i32, i32) {
    %c0_i32 = arith.constant 0 : i32
    %c0_i32_0 = arith.constant 0 : i32
    %c0_i32_1 = arith.constant 0 : i32
    return %c0_i32, %c0_i32_0 : i32, i32
  }
  func.func @transform_6(%arg0: i32) -> (i32, i32) {
    %c0_i32 = arith.constant 0 : i32
    %c0_i32_0 = arith.constant 0 : i32
    %c0_i32_1 = arith.constant 0 : i32
    return %c0_i32, %c0_i32_0 : i32, i32
  }
  func.func @transform_7(%arg0: i32) -> (i32, i32) {
    %c0_i32 = arith.constant 0 : i32
    %c0_i32_0 = arith.constant 0 : i32
    return %arg0, %c0_i32 : i32, i32
  }
}

</mosaic_0001>

<bundles_post_ra>
// kernel: gcn_forward.1
= control target key start
LH: loop header
LB: loop body
LE: loop exit
PB: predicated region body
PF: predicated region fallthrough
CT: control target
= control target key end

     0   :  { %s4371_s24 = smov 0   ;;  %s5082_s0 = inlined_call_operand.vmem [shape: bf16[64,16,16], index: 0, kind: input, shape index: {}]   ;;  %s5083_s1 = inlined_call_operand.vmem [shape: bf16[64,16,8], index: 1, kind: input, shape index: {}]   ;;  %s5084_s2 = inlined_call_operand.vmem [shape: f32[64,16], index: 2, kind: input, shape index: {}]   ;;  %s5085_s3 = inlined_call_operand.vmem [shape: bf16[8,32], index: 3, kind: input, shape index: {}]   ;;  %s5086_s4 = inlined_call_operand.vmem [shape: f32[1,32], index: 4, kind: input, shape index: {}]   ;;  %s5087_s5 = inlined_call_operand.vmem [shape: bf16[32,128], index: 5, kind: input, shape index: {}]   ;;  %s5088_s6 = inlined_call_operand.vmem [shape: f32[1,128], index: 6, kind: input, shape index: {}]   ;;  %s5089_s7 = inlined_call_operand.vmem [shape: f32[64,128], index: 7, kind: output, shape index: {}]  }
   0x1 LB: > { %s3720_s25 = sadd.s32 4294967295, %s4327_s24   ;;  %p3724_p0 = scmp.ge.s32.totalorder %s4327_s24, 1  ;;  %s4327_s24 = sphi %s4371_s24, %s17_s24  }
   0x2   : > { %p262_p1 = scmp.lt.s32.totalorder %s4327_s24, 3 }
   0x4   : > { %p263_p2 = pnand %p3724_p0, %p262_p1 }
   0x6   : > { %266 = sbr.rel (%p263_p2) target bundleno = 834 (0x342), region = 48 }
   0xd   : > { %s3725_s26 = sshll.u32 %s3720_s25, 5  ;;  %v4329_v0 = vmov 0.0   ;;  %vm4330_vm0 = vmmov 0   ;;  %vm472_vm1 = vcmask 130048   ;;  %s3731_s11 = sshll.u32 %s3720_s25, 2  ;;  %v2720_v59 = vlaneseq }
   0xe   : > { %3974 = vmatprep.subr.bf16.mxu0 %v4329_v0  ;;  %3980 = vmatprep.subr.bf16.mxu1 %v4329_v0  ;;  %p307_p3 = scmp.lt.s32.totalorder %s3725_s26, 63  ;;  %p321_p4 = scmp.lt.s32.totalorder %s3731_s11, 7  ;;  %vm2359_vm2 = vcmask 1043456   ;;  %vm2262_vm3 = vcmask 64512   ;;  %vm3136_vm4 = vcmask 261120   ;;  %vm3532_vm5 = vcmask 1041409  }
   0xf   : > { %3976 = vmatprep.mubr.msk.bf16.mxu0 %vm4330_vm0, %v4329_v0  ;;  %3982 = vmatprep.mubr.msk.bf16.mxu1 %vm4330_vm0, %v4329_v0  ;;  %v4567_v60 = vshrl.u32 %v2720_v59, 7  ;;  %vm3534_vm6 = vcmask 1042434   ;;  %vm3536_vm7 = vcmask 1043459   ;;  %vm3538_vm8 = vcmask 1044484  }
  0x10   : > { %s5107_s26 = smov (!%p307_p3, %s3725_s26), 63  ;;  %s5109_s11 = smov (!%p321_p4, %s3731_s11), 7  ;;  %vm3540_vm9 = vcmask 1045509   ;;  %vm3542_vm10 = vcmask 1046534   ;;  %vm3544_vm11 = vcmask 1047559  }
  0x11   : > { %s3871_s27 = sshll.u32 %s5107_s26, 3  ;;  %s3732_s12 = sshll.u32 %s5109_s11, 3  ;;  %v2722_v61 = vsub.s32 0, %v4567_v60 }
  0x12   : > { %s4390_s30 = scalar_lea.vmem %s5082_s0, %s3871_s27  ;;  %s4395_s10 = scalar_lea.vmem %s5083_s1, %s3871_s27 }
  0x13   : > { %v4254_v1 = vld [vmem:[%s4395_s10] sm:$0xff]   ;;  %v4255_v2 = vld [vmem:[%s4395_s10 + $0x8] sm:$0xff]   ;;  %v4258_v5 = vld [vmem:[%s4395_s10 + $0x10] sm:$0xff]   ;;  %s4580_s15 = scalar_lea.vmem %s5084_s2, %s3732_s12  ;;  %s330_s8 = scalar_lea.vmem %s5089_s7, %s3732_s12 }
  0x14   : > { %3975 = vmatpush3.bf16.msra.mxu0 %v4254_v1  ;;  %v4256_v3 = vld [vmem:[%s4390_s30] sm:$0xff]   ;;  %3981 = vmatpush3.bf16.msra.mxu1 %v4255_v2  ;;  %v4257_v4 = vld [vmem:[%s4390_s30 + $0x8] sm:$0xff]   ;;  %v4259_v6 = vld [vmem:[%s4395_s10 + $0x18] sm:$0xff]  }
  0x15   : > { %3986 = vmatprep.subr.bf16.mxu0 %v4329_v0  ;;  %3992 = vmatprep.subr.bf16.mxu1 %v4329_v0  ;;  %v4260_v7 = vld [vmem:[%s4390_s30 + $0x10] sm:$0xff]   ;;  %v4261_v8 = vld [vmem:[%s4390_s30 + $0x18] sm:$0xff]   ;;  %v4262_v9 = vld [vmem:[%s4395_s10 + $0x20] sm:$0xff]  }
  0x16   : > { %v4263_v10 = vld [vmem:[%s4395_s10 + $0x28] sm:$0xff]   ;;  %v4264_v11 = vld [vmem:[%s4390_s30 + $0x20] sm:$0xff]   ;;  %v4266_v13 = vld [vmem:[%s4395_s10 + $0x30] sm:$0xff]  }
  0x17   : > { %3977 = vmatmul.mubr.msk.bf16.vlgmr.msra.gmra.mrb[0].mxu0 %vm472_vm1, %v4256_v3  ;;  %3983 = vmatmul.mubr.msk.bf16.vlgmr.msra.gmra.mrb[0].mxu1 %vm472_vm1, %v4257_v4  ;;  %v4265_v12 = vld [vmem:[%s4390_s30 + $0x28] sm:$0xff]   ;;  %v4267_v14 = vld [vmem:[%s4395_s10 + $0x38] sm:$0xff]   ;;  %v4268_v15 = vld [vmem:[%s4390_s30 + $0x30] sm:$0xff]   ;;  %v2733_v4 = vsub.s32 1, %v4567_v60 }
  0x18   : > { %3987 = vmatpush3.bf16.msra.mxu0 %v4258_v5  ;;  %3993 = vmatpush3.bf16.msra.mxu1 %v4259_v6  ;;  %v4269_v16 = vld [vmem:[%s4390_s30 + $0x38] sm:$0xff]   ;;  %v4270_v17 = vld [vmem:[%s4395_s10 + $0x40] sm:$0xff]   ;;  %v4271_v18 = vld [vmem:[%s4395_s10 + $0x48] sm:$0xff]  }
  0x19   : > { %3988 = vmatprep.mubr.msk.bf16.mxu0 %vm4330_vm0, %v4329_v0  ;;  %3994 = vmatprep.mubr.msk.bf16.mxu1 %vm4330_vm0, %v4329_v0  ;;  %v4272_v19 = vld [vmem:[%s4390_s30 + $0x40] sm:$0xff]   ;;  %v4273_v20 = vld [vmem:[%s4390_s30 + $0x48] sm:$0xff]   ;;  %v4274_v21 = vld [vmem:[%s4395_s10 + $0x50] sm:$0xff]  }
  0x1a   : > { %3998 = vmatprep.subr.bf16.mxu0 %v4329_v0  ;;  %4004 = vmatprep.subr.bf16.mxu1 %v4329_v0  ;;  %v4275_v22 = vld [vmem:[%s4395_s10 + $0x58] sm:$0xff]   ;;  %v4276_v23 = vld [vmem:[%s4390_s30 + $0x50] sm:$0xff]   ;;  %v4278_v25 = vld [vmem:[%s4395_s10 + $0x60] sm:$0xff]  }
  0x1b   : > { %v4277_v24 = vld [vmem:[%s4390_s30 + $0x58] sm:$0xff]   ;;  %v4279_v26 = vld [vmem:[%s4395_s10 + $0x68] sm:$0xff]   ;;  %v4280_v27 = vld [vmem:[%s4390_s30 + $0x60] sm:$0xff]  }
  0x1c   : > { %v4281_v28 = vld [vmem:[%s4390_s30 + $0x68] sm:$0xff]   ;;  %v4282_v29 = vld [vmem:[%s4395_s10 + $0x70] sm:$0xff]   ;;  %v4283_v30 = vld [vmem:[%s4395_s10 + $0x78] sm:$0xff]  }
  0x1d   : > { %v4284_v31 = vld [vmem:[%s4390_s30 + $0x70] sm:$0xff]   ;;  %v4285_v32 = vld [vmem:[%s4390_s30 + $0x78] sm:$0xff]   ;;  %v4286_v33 = vld [vmem:[%s4395_s10 + $0x80] sm:$0xff]  }
  0x1e   : > { %v4287_v34 = vld [vmem:[%s4395_s10 + $0x88] sm:$0xff]   ;;  %v4288_v35 = vld [vmem:[%s4390_s30 + $0x80] sm:$0xff]   ;;  %v4290_v37 = vld [vmem:[%s4395_s10 + $0x90] sm:$0xff]  }
  0x1f   : > { %3989 = vmatmul.mubr.msk.bf16.vlgmr.msra.gmra.mrb[4].mxu0 %vm472_vm1, %v4260_v7  ;;  %3995 = vmatmul.mubr.msk.bf16.vlgmr.msra.gmra.mrb[4].mxu1 %vm472_vm1, %v4261_v8  ;;  %v4289_v36 = vld [vmem:[%s4390_s30 + $0x88] sm:$0xff]   ;;  %v4291_v38 = vld [vmem:[%s4395_s10 + $0x98] sm:$0xff]   ;;  %v4292_v39 = vld [vmem:[%s4390_s30 + $0x90] sm:$0xff]  }
  0x20   : > { %3999 = vmatpush3.bf16.msra.mxu0 %v4262_v9  ;;  %4005 = vmatpush3.bf16.msra.mxu1 %v4263_v10  ;;  %v4293_v40 = vld [vmem:[%s4390_s30 + $0x98] sm:$0xff]   ;;  %v4294_v41 = vld [vmem:[%s4395_s10 + $0xa0] sm:$0xff]   ;;  %v4295_v42 = vld [vmem:[%s4395_s10 + $0xa8] sm:$0xff]  }
  0x21   : > { %4000 = vmatprep.mubr.msk.bf16.mxu0 %vm4330_vm0, %v4329_v0  ;;  %4006 = vmatprep.mubr.msk.bf16.mxu1 %vm4330_vm0, %v4329_v0  ;;  %v4296_v43 = vld [vmem:[%s4390_s30 + $0xa0] sm:$0xff]   ;;  %v4297_v44 = vld [vmem:[%s4390_s30 + $0xa8] sm:$0xff]   ;;  %v4298_v45 = vld [vmem:[%s4395_s10 + $0xb0] sm:$0xff]  }
  0x22   : > { %4010 = vmatprep.subr.bf16.mxu0 %v4329_v0  ;;  %4016 = vmatprep.subr.bf16.mxu1 %v4329_v0  ;;  %v4299_v46 = vld [vmem:[%s4395_s10 + $0xb8] sm:$0xff]   ;;  %v4300_v47 = vld [vmem:[%s4390_s30 + $0xb0] sm:$0xff]   ;;  %v4302_v49 = vld [vmem:[%s4395_s10 + $0xc0] sm:$0xff]  }
  0x23   : > { %v4301_v48 = vld [vmem:[%s4390_s30 + $0xb8] sm:$0xff]   ;;  %v4303_v50 = vld [vmem:[%s4395_s10 + $0xc8] sm:$0xff]   ;;  %v4304_v51 = vld [vmem:[%s4390_s30 + $0xc0] sm:$0xff]  }
  0x24   : > { %v4305_v52 = vld [vmem:[%s4390_s30 + $0xc8] sm:$0xff]   ;;  %v4306_v53 = vld [vmem:[%s4395_s10 + $0xd0] sm:$0xff]   ;;  %v4307_v54 = vld [vmem:[%s4395_s10 + $0xd8] sm:$0xff]  }
  0x25   : > { %v4308_v55 = vld [vmem:[%s4390_s30 + $0xd0] sm:$0xff]   ;;  %v4309_v56 = vld [vmem:[%s4390_s30 + $0xd8] sm:$0xff]   ;;  %v4310_v57 = vld [vmem:[%s4395_s10 + $0xe0] sm:$0xff]  }
  0x26   : > { %v4311_v58 = vld [vmem:[%s4395_s10 + $0xe8] sm:$0xff]   ;;  %v4312_v62 = vld [vmem:[%s4390_s30 + $0xe0] sm:$0xff]   ;;  %v4314_v2 = vld [vmem:[%s4395_s10 + $0xf0] sm:$0xff]  }
  0x27   : > { %4001 = vmatmul.mubr.msk.bf16.vlgmr.msra.gmra.mrb[8].mxu0 %vm472_vm1, %v4264_v11  ;;  %4007 = vmatmul.mubr.msk.bf16.vlgmr.msra.gmra.mrb[8].mxu1 %vm472_vm1, %v4265_v12  ;;  %v4586_v63 = vld [vmem:[%s4580_s15] sm:$0xff]  ;;  %v4313_v1 = vld [vmem:[%s4390_s30 + $0xe8] sm:$0xff]   ;;  %v4315_v5 = vld [vmem:[%s4395_s10 + $0xf8] sm:$0xff]  }
  0x28   : > { %4011 = vmatpush3.bf16.msra.mxu0 %v4266_v13  ;;  %4017 = vmatpush3.bf16.msra.mxu1 %v4267_v14  ;;  %v2723_v3 = vrot.slane %v4586_v63, %v2722_v61  ;;  %v2254_v6 = vld [vmem:[%s5085_s3] sm:$0xf]  ;;  %v2734_v7 = vrot.slane %v4586_v63, %v2733_v4  ;;  %v4316_v8 = vld [vmem:[%s4390_s30 + $0xf0] sm:$0xff]   ;;  %v4605_v9 = vld [vmem:[%s4580_s15 + $0x8] sm:$0xff]  ;;  %v2744_v13 = vsub.s32 2, %v4567_v60 }
  0x29   : > { %4012 = vmatprep.mubr.msk.bf16.mxu0 %vm4330_vm0, %v4329_v0  ;;  %4018 = vmatprep.mubr.msk.bf16.mxu1 %vm4330_vm0, %v4329_v0  ;;  %v4317_v10 = vld [vmem:[%s4390_s30 + $0xf8] sm:$0xff]   ;;  %v2361_v11 = vsel %vm2359_vm2, %v2254_v6, 0  ;;  %v2811_v12 = vrot.slane %v4605_v9, %v2722_v61 }
  0x2a   : > { %4022 = vmatprep.subr.bf16.mxu0 %v4329_v0  ;;  %4028 = vmatprep.subr.bf16.mxu1 %v4329_v0  ;;  %v2745_v14 = vrot.slane %v4586_v63, %v2744_v13 }
  0x2b   : > { %2725 = vbcast.lane.b32.xlu0 %v2723_v3, 256  ;;  %2736 = vbcast.lane.b32.xlu1 %v2734_v7, 256 }
  0x2f   : > { %4013 = vmatmul.mubr.msk.bf16.vlgmr.msra.gmra.mrb[12].mxu0 %vm472_vm1, %v4268_v15  ;;  %4019 = vmatmul.mubr.msk.bf16.vlgmr.msra.gmra.mrb[12].mxu1 %vm472_vm1, %v4269_v16  ;;  %v2833_v15 = vrot.slane %v4605_v9, %v2744_v13  ;;  %v4616_v16 = vld [vmem:[%s4580_s15 + $0x10] sm:$0xff] }
  0x30   : > { %4023 = vmatpush3.bf16.msra.mxu0 %v4270_v17  ;;  %4029 = vmatpush3.bf16.msra.mxu1 %v4271_v18  ;;  %v2899_v17 = vrot.slane %v4616_v16, %v2722_v61  ;;  %v2910_v18 = vrot.slane %v4616_v16, %v2733_v4 }
  0x31   : > { %4024 = vmatprep.mubr.msk.bf16.mxu0 %vm4330_vm0, %v4329_v0  ;;  %4030 = vmatprep.mubr.msk.bf16.mxu1 %vm4330_vm0, %v4329_v0 }
  0x32   : > { %4034 = vmatprep.subr.bf16.mxu0 %v4329_v0  ;;  %4040 = vmatprep.subr.bf16.mxu1 %v4329_v0 }
  0x33   : > { %2729 = vbcast.lane.b32.xlu0 %v2723_v3, 264  ;;  %2740 = vbcast.lane.b32.xlu1 %v2734_v7, 264 }
  0x37   : > { %4025 = vmatmul.mubr.msk.bf16.vlgmr.msra.gmra.mrb[16].mxu0 %vm472_vm1, %v4272_v19  ;;  %4031 = vmatmul.mubr.msk.bf16.vlgmr.msra.gmra.mrb[16].mxu1 %vm472_vm1, %v4273_v20  ;;  %v4621_v19 = vld [vmem:[%s4580_s15 + $0x18] sm:$0xff] }
  0x38   : > { %4035 = vmatpush3.bf16.msra.mxu0 %v4274_v21  ;;  %4041 = vmatpush3.bf16.msra.mxu1 %v4275_v22  ;;  %v2987_v20 = vrot.slane %v4621_v19, %v2722_v61  ;;  %v2998_v21 = vrot.slane %v4621_v19, %v2733_v4  ;;  %v2755_v22 = vsub.s32 3, %v4567_v60 }
  0x39   : > { %4036 = vmatprep.mubr.msk.bf16.mxu0 %vm4330_vm0, %v4329_v0  ;;  %4042 = vmatprep.mubr.msk.bf16.mxu1 %vm4330_vm0, %v4329_v0 }
  0x3a   : > { %4046 = vmatprep.subr.bf16.mxu0 %v4329_v0  ;;  %4052 = vmatprep.subr.bf16.mxu1 %v4329_v0 }
  0x3b   : > { %2813 = vbcast.lane.b32.xlu0 %v2811_v12, 256  ;;  %2817 = vbcast.lane.b32.xlu1 %v2811_v12, 264 }
  0x3f   : > { %4037 = vmatmul.mubr.msk.bf16.vlgmr.msra.gmra.mrb[20].mxu0 %vm472_vm1, %v4276_v23  ;;  %4043 = vmatmul.mubr.msk.bf16.vlgmr.msra.gmra.mrb[20].mxu1 %vm472_vm1, %v4277_v24  ;;  %v2756_v23 = vrot.slane %v4586_v63, %v2755_v22  ;;  %v2844_v24 = vrot.slane %v4605_v9, %v2755_v22 }
  0x40   : > { %4047 = vmatpush3.bf16.msra.mxu0 %v4278_v25  ;;  %4053 = vmatpush3.bf16.msra.mxu1 %v4279_v26  ;;  %v2921_v25 = vrot.slane %v4616_v16, %v2744_v13  ;;  %v3009_v26 = vrot.slane %v4621_v19, %v2744_v13 }
  0x41   : > { %4048 = vmatprep.mubr.msk.bf16.mxu0 %vm4330_vm0, %v4329_v0  ;;  %4054 = vmatprep.mubr.msk.bf16.mxu1 %vm4330_vm0, %v4329_v0 }
  0x42   : > { %4058 = vmatprep.subr.bf16.mxu0 %v4329_v0  ;;  %4064 = vmatprep.subr.bf16.mxu1 %v4329_v0 }
  0x47   : > { %4049 = vmatmul.mubr.msk.bf16.vlgmr.msra.gmra.mrb[24].mxu0 %vm472_vm1, %v4280_v27  ;;  %4055 = vmatmul.mubr.msk.bf16.vlgmr.msra.gmra.mrb[24].mxu1 %vm472_vm1, %v4281_v28  ;;  %v2766_v27 = vsub.s32 4, %v4567_v60 }
  0x48   : > { %4059 = vmatpush3.bf16.msra.mxu0 %v4282_v29  ;;  %4065 = vmatpush3.bf16.msra.mxu1 %v4283_v30  ;;  %v2932_v30 = vrot.slane %v4616_v16, %v2755_v22 }
  0x49   : > { %4060 = vmatprep.mubr.msk.bf16.mxu0 %vm4330_vm0, %v4329_v0  ;;  %4066 = vmatprep.mubr.msk.bf16.mxu1 %vm4330_vm0, %v4329_v0  ;;  %v2767_v28 = vrot.slane %v4586_v63, %v2766_v27  ;;  %v2855_v29 = vrot.slane %v4605_v9, %v2766_v27 }
  0x4a   : > { %4070 = vmatprep.subr.bf16.mxu0 %v4329_v0  ;;  %4076 = vmatprep.subr.bf16.mxu1 %v4329_v0 }
  0x4f   : > { %4061 = vmatmul.mubr.msk.bf16.vlgmr.msra.gmra.mrb[28].mxu0 %vm472_vm1, %v4284_v31  ;;  %4067 = vmatmul.mubr.msk.bf16.vlgmr.msra.gmra.mrb[28].mxu1 %vm472_vm1, %v4285_v32  ;;  %v3020_v31 = vrot.slane %v4621_v19, %v2755_v22  ;;  %v2777_v32 = vsub.s32 5, %v4567_v60 }
  0x50   : > { %4071 = vmatpush3.bf16.msra.mxu0 %v4286_v33  ;;  %4077 = vmatpush3.bf16.msra.mxu1 %v4287_v34 }
  0x51   : > { %4072 = vmatprep.mubr.msk.bf16.mxu0 %vm4330_vm0, %v4329_v0  ;;  %4078 = vmatprep.mubr.msk.bf16.mxu1 %vm4330_vm0, %v4329_v0  ;;  %v2778_v33 = vrot.slane %v4586_v63, %v2777_v32  ;;  %v2866_v34 = vrot.slane %v4605_v9, %v2777_v32 }
  0x52   : > { %4082 = vmatprep.subr.bf16.mxu0 %v4329_v0  ;;  %4088 = vmatprep.subr.bf16.mxu1 %v4329_v0 }
  0x57   : > { %4073 = vmatmul.mubr.msk.bf16.vlgmr.msra.gmra.mrb[32].mxu0 %vm472_vm1, %v4288_v35  ;;  %4079 = vmatmul.mubr.msk.bf16.vlgmr.msra.gmra.mrb[32].mxu1 %vm472_vm1, %v4289_v36  ;;  %v2943_v35 = vrot.slane %v4616_v16, %v2766_v27  ;;  %v3031_v36 = vrot.slane %v4621_v19, %v2766_v27 }
  0x58   : > { %4083 = vmatpush3.bf16.msra.mxu0 %v4290_v37  ;;  %4089 = vmatpush3.bf16.msra.mxu1 %v4291_v38  ;;  %v2788_v37 = vsub.s32 6, %v4567_v60 }
  0x59   : > { %4084 = vmatprep.mubr.msk.bf16.mxu0 %vm4330_vm0, %v4329_v0  ;;  %4090 = vmatprep.mubr.msk.bf16.mxu1 %vm4330_vm0, %v4329_v0 }
  0x5a   : > { %4094 = vmatprep.subr.bf16.mxu0 %v4329_v0  ;;  %4100 = vmatprep.subr.bf16.mxu1 %v4329_v0  ;;  %v2789_v38 = vrot.slane %v4586_v63, %v2788_v37  ;;  %v3053_v3 = vrot.slane %v4621_v19, %v2788_v37 }
  0x5f   : > { %4085 = vmatmul.mubr.msk.bf16.vlgmr.msra.gmra.mrb[36].mxu0 %vm472_vm1, %v4292_v39  ;;  %4091 = vmatmul.mubr.msk.bf16.vlgmr.msra.gmra.mrb[36].mxu1 %vm472_vm1, %v4293_v40  ;;  %v2877_v39 = vrot.slane %v4605_v9, %v2788_v37  ;;  %v2954_v40 = vrot.slane %v4616_v16, %v2777_v32 }
  0x60   : > { %4095 = vmatpush3.bf16.msra.mxu0 %v4294_v41  ;;  %4101 = vmatpush3.bf16.msra.mxu1 %v4295_v42  ;;  %v3042_v41 = vrot.slane %v4621_v19, %v2777_v32  ;;  %v4646_v42 = vsub.s32 7, %v4567_v60 }
  0x61   : > { %4096 = vmatprep.mubr.msk.bf16.mxu0 %vm4330_vm0, %v4329_v0  ;;  %4102 = vmatprep.mubr.msk.bf16.mxu1 %vm4330_vm0, %v4329_v0 }
  0x62   : > { %4106 = vmatprep.subr.bf16.mxu0 %v4329_v0  ;;  %4112 = vmatprep.subr.bf16.mxu1 %v4329_v0  ;;  %v2976_v12 = vrot.slane %v4616_v16, %v4646_v42 }
  0x67   : > { %4097 = vmatmul.mubr.msk.bf16.vlgmr.msra.gmra.mrb[40].mxu0 %vm472_vm1, %v4296_v43  ;;  %4103 = vmatmul.mubr.msk.bf16.vlgmr.msra.gmra.mrb[40].mxu1 %vm472_vm1, %v4297_v44 }
  0x68   : > { %4107 = vmatpush3.bf16.msra.mxu0 %v4298_v45  ;;  %4113 = vmatpush3.bf16.msra.mxu1 %v4299_v46 }
  0x69   : > { %4108 = vmatprep.mubr.msk.bf16.mxu0 %vm4330_vm0, %v4329_v0  ;;  %4114 = vmatprep.mubr.msk.bf16.mxu1 %vm4330_vm0, %v4329_v0 }
  0x6a   : > { %4118 = vmatprep.subr.bf16.mxu0 %v4329_v0  ;;  %4124 = vmatprep.subr.bf16.mxu1 %v4329_v0 }
  0x6f   : > { %4109 = vmatmul.mubr.msk.bf16.vlgmr.msra.gmra.mrb[44].mxu0 %vm472_vm1, %v4300_v47  ;;  %4115 = vmatmul.mubr.msk.bf16.vlgmr.msra.gmra.mrb[44].mxu1 %vm472_vm1, %v4301_v48 }
  0x70   : > { %4119 = vmatpush3.bf16.msra.mxu0 %v4302_v49  ;;  %4125 = vmatpush3.bf16.msra.mxu1 %v4303_v50 }
  0x71   : > { %4120 = vmatprep.mubr.msk.bf16.mxu0 %vm4330_vm0, %v4329_v0  ;;  %4126 = vmatprep.mubr.msk.bf16.mxu1 %vm4330_vm0, %v4329_v0 }
  0x72   : > { %4130 = vmatprep.subr.bf16.mxu0 %v4329_v0  ;;  %4136 = vmatprep.subr.bf16.mxu1 %v4329_v0 }
  0x77   : > { %4121 = vmatmul.mubr.msk.bf16.vlgmr.msra.gmra.mrb[48].mxu0 %vm472_vm1, %v4304_v51  ;;  %4127 = vmatmul.mubr.msk.bf16.vlgmr.msra.gmra.mrb[48].mxu1 %vm472_vm1, %v4305_v52  ;;  %v2800_v51 = vrot.slane %v4586_v63, %v4646_v42  ;;  %v2965_v63 = vrot.slane %v4616_v16, %v2788_v37 }
  0x78   : > { %4131 = vmatpush3.bf16.msra.mxu0 %v4306_v53  ;;  %4137 = vmatpush3.bf16.msra.mxu1 %v4307_v54  ;;  %v2888_v54 = vrot.slane %v4605_v9, %v4646_v42 }
  0x79   : > { %4132 = vmatprep.mubr.msk.bf16.mxu0 %vm4330_vm0, %v4329_v0  ;;  %4138 = vmatprep.mubr.msk.bf16.mxu1 %vm4330_vm0, %v4329_v0 }
  0x7a   : > { %4142 = vmatprep.subr.bf16.mxu0 %v4329_v0  ;;  %4148 = vmatprep.subr.bf16.mxu1 %v4329_v0 }
  0x7f   : > { %4133 = vmatmul.mubr.msk.bf16.vlgmr.msra.gmra.mrb[52].mxu0 %vm472_vm1, %v4308_v55  ;;  %4139 = vmatmul.mubr.msk.bf16.vlgmr.msra.gmra.mrb[52].mxu1 %vm472_vm1, %v4309_v56 }
  0x80   : > { %4143 = vmatpush3.bf16.msra.mxu0 %v4310_v57  ;;  %4149 = vmatpush3.bf16.msra.mxu1 %v4311_v58 }
  0x81   : > { %4144 = vmatprep.mubr.msk.bf16.mxu0 %vm4330_vm0, %v4329_v0  ;;  %4150 = vmatprep.mubr.msk.bf16.mxu1 %vm4330_vm0, %v4329_v0 }
  0x82   : > { %4154 = vmatprep.subr.bf16.mxu0 %v4329_v0  ;;  %4160 = vmatprep.subr.bf16.mxu1 %v4329_v0 }
  0x87   : > { %4145 = vmatmul.mubr.msk.bf16.vlgmr.msra.gmra.mrb[56].mxu0 %vm472_vm1, %v4312_v62  ;;  %4151 = vmatmul.mubr.msk.bf16.vlgmr.msra.gmra.mrb[56].mxu1 %vm472_vm1, %v4313_v1 }
  0x88   : > { %4155 = vmatpush3.bf16.msra.mxu0 %v4314_v2  ;;  %4161 = vmatpush3.bf16.msra.mxu1 %v4315_v5 }
  0x89   : > { %4156 = vmatprep.mubr.msk.bf16.mxu0 %vm4330_vm0, %v4329_v0  ;;  %4162 = vmatprep.mubr.msk.bf16.mxu1 %vm4330_vm0, %v4329_v0  ;;  %v2822_v0 = vrot.slane %v4605_v9, %v2733_v4 }
  0x8a   : > { %4242 = vmatprep.subr.msk.bf16.mxu0 %vm2359_vm2, %v2254_v6  ;;  %4243 = vmatprep.subr.msk.bf16.mxu1 %vm2359_vm2, %v2254_v6 }
  0x8b   : > { %2824 = vbcast.lane.b32.xlu0 %v2822_v0, 256  ;;  %2828 = vbcast.lane.b32.xlu1 %v2822_v0, 264 }
  0x8f   : > { %4157 = vmatmul.mubr.msk.bf16.vlgmr.msra.gmra.mrb[60].mxu0 %vm472_vm1, %v4316_v8  ;;  %4163 = vmatmul.mubr.msk.bf16.vlgmr.msra.gmra.mrb[60].mxu1 %vm472_vm1, %v4317_v10 }
  0x90   : > { %4167 = vmatpush3.bf16.msra.mxu0 %v2361_v11  ;;  %4241 = vmatpush3.bf16.msra.mxu1 %v2361_v11 }
  0x91   : > { %2747 = vbcast.lane.b32.xlu0 %v2745_v14, 256  ;;  %2751 = vbcast.lane.b32.xlu1 %v2745_v14, 264 }
  0x95   : > { %2835 = vbcast.lane.b32.xlu0 %v2833_v15, 256  ;;  %2839 = vbcast.lane.b32.xlu1 %v2833_v15, 264 }
  0x99   : > { %2901 = vbcast.lane.b32.xlu0 %v2899_v17, 256  ;;  %2905 = vbcast.lane.b32.xlu1 %v2899_v17, 264 }
  0x9d   : > { %2912 = vbcast.lane.b32.xlu0 %v2910_v18, 256  ;;  %2916 = vbcast.lane.b32.xlu1 %v2910_v18, 264 }
  0xa1   : > { %2989 = vbcast.lane.b32.xlu0 %v2987_v20, 256  ;;  %2993 = vbcast.lane.b32.xlu1 %v2987_v20, 264 }
  0xa5   : > { %3000 = vbcast.lane.b32.xlu0 %v2998_v21, 256  ;;  %3004 = vbcast.lane.b32.xlu1 %v2998_v21, 264 }
  0xa9   : > { %2758 = vbcast.lane.b32.xlu0 %v2756_v23, 256  ;;  %2762 = vbcast.lane.b32.xlu1 %v2756_v23, 264 }
  0xad   : > { %2846 = vbcast.lane.b32.xlu0 %v2844_v24, 256  ;;  %2850 = vbcast.lane.b32.xlu1 %v2844_v24, 264 }
  0xb1   : > { %2923 = vbcast.lane.b32.xlu0 %v2921_v25, 256  ;;  %2927 = vbcast.lane.b32.xlu1 %v2921_v25, 264 }
  0xb5   : > { %3011 = vbcast.lane.b32.xlu0 %v3009_v26, 256  ;;  %3015 = vbcast.lane.b32.xlu1 %v3009_v26, 264 }
  0xb9   : > { %2769 = vbcast.lane.b32.xlu0 %v2767_v28, 256  ;;  %2773 = vbcast.lane.b32.xlu1 %v2767_v28, 264 }
  0xbd   : > { %2857 = vbcast.lane.b32.xlu0 %v2855_v29, 256  ;;  %2861 = vbcast.lane.b32.xlu1 %v2855_v29, 264 }
  0xc1   : > { %2934 = vbcast.lane.b32.xlu0 %v2932_v30, 256  ;;  %2938 = vbcast.lane.b32.xlu1 %v2932_v30, 264 }
  0xc5   : > { %3022 = vbcast.lane.b32.xlu0 %v3020_v31, 256  ;;  %3026 = vbcast.lane.b32.xlu1 %v3020_v31, 264 }
  0xc9   : > { %2780 = vbcast.lane.b32.xlu0 %v2778_v33, 256  ;;  %2784 = vbcast.lane.b32.xlu1 %v2778_v33, 264 }
  0xcd   : > { %2868 = vbcast.lane.b32.xlu0 %v2866_v34, 256  ;;  %2872 = vbcast.lane.b32.xlu1 %v2866_v34, 264 }
  0xd1   : > { %2945 = vbcast.lane.b32.xlu0 %v2943_v35, 256  ;;  %2949 = vbcast.lane.b32.xlu1 %v2943_v35, 264 }
  0xd5   : > { %3033 = vbcast.lane.b32.xlu0 %v3031_v36, 256  ;;  %3037 = vbcast.lane.b32.xlu1 %v3031_v36, 264 }
  0xd9   : > { %2791 = vbcast.lane.b32.xlu0 %v2789_v38, 256  ;;  %2795 = vbcast.lane.b32.xlu1 %v2789_v38, 264 }
  0xdd   : > { %2879 = vbcast.lane.b32.xlu0 %v2877_v39, 256  ;;  %2883 = vbcast.lane.b32.xlu1 %v2877_v39, 264 }
  0xe1   : > { %2956 = vbcast.lane.b32.xlu0 %v2954_v40, 256  ;;  %2960 = vbcast.lane.b32.xlu1 %v2954_v40, 264 }
  0xe5   : > { %3044 = vbcast.lane.b32.xlu0 %v3042_v41, 256  ;;  %3048 = vbcast.lane.b32.xlu1 %v3042_v41, 264 }
  0xe9   : > { %2802 = vbcast.lane.b32.xlu0 %v2800_v51, 256  ;;  %2806 = vbcast.lane.b32.xlu1 %v2800_v51, 264 }
  0xea   : > { %v510_v43 = vpop.f32.mrb[0].mxu0  ;;  %v565_v44 = vpop.f32.mrb[0].mxu1 }
  0xeb   : > { %v3978_v45 = vpop.f32.mrb[1].mxu0  ;;  %v3984_v46 = vpop.f32.mrb[1].mxu1 }
  0xec   : > { %v513_v47 = vpop.f32.mrb[2].mxu0  ;;  %v568_v49 = vpop.f32.mrb[2].mxu1 }
  0xed   : > { %v2222_v48 = vpack.c.bf16 %v513_v47, %v510_v43  ;;  %v3979_v50 = vpop.f32.mrb[3].mxu0  ;;  %v2223_v52 = vpack.c.bf16 %v568_v49, %v565_v44  ;;  %v3985_v53 = vpop.f32.mrb[3].mxu1  ;;  %2890 = vbcast.lane.b32.xlu0 %v2888_v54, 256  ;;  %2894 = vbcast.lane.b32.xlu1 %v2888_v54, 264 }
  0xef   : > { %4168 = vmatprep.mubr.msk.bf16.mxu0 %vm2262_vm3, %v2222_v48 }
  0xf0   : > { %4169 = vmatmul.mubr.msk.bf16.vlgmr.msra.gmra.mrb[64].mxu0 %vm2262_vm3, %v2223_v52 }
  0xf1   : > { %2967 = vbcast.lane.b32.xlu0 %v2965_v63, 256  ;;  %2971 = vbcast.lane.b32.xlu1 %v2965_v63, 264 }
  0xf2   : > { %v620_v55 = vpop.f32.mrb[4].mxu0  ;;  %v675_v56 = vpop.f32.mrb[4].mxu1 }
  0xf3   : > { %v3990_v57 = vpop.f32.mrb[5].mxu0  ;;  %v3996_v58 = vpop.f32.mrb[5].mxu1 }
  0xf4   : > { %v623_v59 = vpop.f32.mrb[6].mxu0  ;;  %v678_v61 = vpop.f32.mrb[6].mxu1 }
  0xf5   : > { %v2224_v60 = vpack.c.bf16 %v623_v59, %v620_v55  ;;  %v3991_v62 = vpop.f32.mrb[7].mxu0  ;;  %v2225_v1 = vpack.c.bf16 %v678_v61, %v675_v56  ;;  %v3997_v2 = vpop.f32.mrb[7].mxu1  ;;  %3055 = vbcast.lane.b32.xlu0 %v3053_v3, 256  ;;  %3059 = vbcast.lane.b32.xlu1 %v3053_v3, 264 }
  0xf7   : > { %4172 = vmatprep.mubr.msk.bf16.mxu0 %vm2262_vm3, %v2224_v60 }
  0xf8   : > { %4173 = vmatmul.mubr.msk.bf16.gmra.mrb[68].mxu0 %vm2262_vm3, %v2225_v1 }
  0xf9   : > { %2978 = vbcast.lane.b32.xlu0 %v2976_v12, 256  ;;  %2982 = vbcast.lane.b32.xlu1 %v2976_v12, 264 }
  0xfa   : > { %v730_v4 = vpop.f32.mrb[8].mxu0  ;;  %v785_v5 = vpop.f32.mrb[8].mxu1 }
  0xfb   : > { %v4002_v6 = vpop.f32.mrb[9].mxu0  ;;  %v4008_v7 = vpop.f32.mrb[9].mxu1 }
  0xfc   : > { %v733_v8 = vpop.f32.mrb[10].mxu0  ;;  %v788_v10 = vpop.f32.mrb[10].mxu1 }
  0xfd   : > { %v2226_v9 = vpack.c.bf16 %v733_v8, %v730_v4  ;;  %v4003_v11 = vpop.f32.mrb[11].mxu0  ;;  %v2227_v0 = vpack.c.bf16 %v788_v10, %v785_v5  ;;  %v4009_v13 = vpop.f32.mrb[11].mxu1 }
  0xff   : > { %4176 = vmatprep.mubr.msk.bf16.mxu0 %vm2262_vm3, %v2226_v9 }
 0x100   : > { %4177 = vmatmul.mubr.msk.bf16.gmra.mrb[72].mxu0 %vm2262_vm3, %v2227_v0 }
 0x102   : > { %v840_v14 = vpop.f32.mrb[12].mxu0  ;;  %v895_v15 = vpop.f32.mrb[12].mxu1 }
 0x103   : > { %v4014_v17 = vpop.f32.mrb[13].mxu0  ;;  %v4020_v18 = vpop.f32.mrb[13].mxu1 }
 0x104   : > { %v843_v20 = vpop.f32.mrb[14].mxu0  ;;  %v898_v22 = vpop.f32.mrb[14].mxu1 }
 0x105   : > { %v2228_v21 = vpack.c.bf16 %v843_v20, %v840_v14  ;;  %v4015_v23 = vpop.f32.mrb[15].mxu0  ;;  %v2229_v24 = vpack.c.bf16 %v898_v22, %v895_v15  ;;  %v4021_v25 = vpop.f32.mrb[15].mxu1 }
 0x107   : > { %4180 = vmatprep.mubr.msk.bf16.mxu0 %vm2262_vm3, %v2228_v21 }
 0x108   : > { %4181 = vmatmul.mubr.msk.bf16.gmra.mrb[76].mxu0 %vm2262_vm3, %v2229_v24  ;;  %v4676_v24 = vpop.permute.xlu0 %2725 }
 0x10a   : > { %v950_v16 = vpop.f32.mrb[16].mxu0  ;;  %v1005_v26 = vpop.f32.mrb[16].mxu1 }
 0x10b   : > { %v4026_v27 = vpop.f32.mrb[17].mxu0  ;;  %v4032_v28 = vpop.f32.mrb[17].mxu1 }
 0x10c   : > { %v953_v29 = vpop.f32.mrb[18].mxu0  ;;  %v1008_v31 = vpop.f32.mrb[18].mxu1 }
 0x10d   : > { %v2230_v30 = vpack.c.bf16 %v953_v29, %v950_v16  ;;  %v4027_v32 = vpop.f32.mrb[19].mxu0  ;;  %v2231_v33 = vpack.c.bf16 %v1008_v31, %v1005_v26  ;;  %v4033_v34 = vpop.f32.mrb[19].mxu1 }
 0x10e   : > { %v4678_v16 = vpop.permute.xlu1 %2736 }
 0x10f   : > { %4184 = vmatprep.mubr.msk.bf16.mxu0 %vm2262_vm3, %v2230_v30 }
 0x110   : > { %4185 = vmatmul.mubr.msk.bf16.gmra.mrb[80].mxu0 %vm2262_vm3, %v2231_v33 }
 0x112   : > { %v1060_v35 = vpop.f32.mrb[20].mxu0  ;;  %v1115_v36 = vpop.f32.mrb[20].mxu1 }
 0x113   : > { %v4038_v37 = vpop.f32.mrb[21].mxu0  ;;  %v4044_v38 = vpop.f32.mrb[21].mxu1 }
 0x114   : > { %v1063_v39 = vpop.f32.mrb[22].mxu0  ;;  %v1118_v41 = vpop.f32.mrb[22].mxu1 }
 0x115   : > { %v2232_v40 = vpack.c.bf16 %v1063_v39, %v1060_v35  ;;  %v4039_v43 = vpop.f32.mrb[23].mxu0  ;;  %v2233_v44 = vpack.c.bf16 %v1118_v41, %v1115_v36  ;;  %v4045_v45 = vpop.f32.mrb[23].mxu1 }
 0x116   : > { %v4682_v35 = vpop.permute.xlu0 %2729  ;;  %v4684_v37 = vpop.permute.xlu1 %2740 }
 0x117   : > { %4188 = vmatprep.mubr.msk.bf16.mxu0 %vm2262_vm3, %v2232_v40 }
 0x118   : > { %4189 = vmatmul.mubr.msk.bf16.gmra.mrb[84].mxu0 %vm2262_vm3, %v2233_v44 }
 0x11a   : > { %v1170_v46 = vpop.f32.mrb[24].mxu0  ;;  %v1225_v47 = vpop.f32.mrb[24].mxu1 }
 0x11b   : > { %v4050_v48 = vpop.f32.mrb[25].mxu0  ;;  %v4056_v49 = vpop.f32.mrb[25].mxu1 }
 0x11c   : > { %v1173_v50 = vpop.f32.mrb[26].mxu0  ;;  %v1228_v52 = vpop.f32.mrb[26].mxu1 }
 0x11d   : > { %v2234_v51 = vpack.c.bf16 %v1173_v50, %v1170_v46  ;;  %v4051_v53 = vpop.f32.mrb[27].mxu0  ;;  %v2235_v54 = vpack.c.bf16 %v1228_v52, %v1225_v47  ;;  %v4057_v55 = vpop.f32.mrb[27].mxu1 }
 0x11e   : > { %v4688_v48 = vpop.permute.xlu0 %2813  ;;  %v4690_v50 = vpop.permute.xlu1 %2817  ;;  %v3064_v55 = vrot.slane %v4621_v19, %v4646_v42 }
 0x11f   : > { %4192 = vmatprep.mubr.msk.bf16.mxu0 %vm2262_vm3, %v2234_v51 }
 0x120   : > { %4193 = vmatmul.mubr.msk.bf16.gmra.mrb[88].mxu0 %vm2262_vm3, %v2235_v54  ;;  %3066 = vbcast.lane.b32.xlu0 %v3064_v55, 256 }
 0x121   : > { %3070 = vbcast.lane.b32.xlu1 %v3064_v55, 264 }
 0x122   : > { %v1280_v56 = vpop.f32.mrb[28].mxu0  ;;  %v1335_v57 = vpop.f32.mrb[28].mxu1 }
 0x123   : > { %v4062_v58 = vpop.f32.mrb[29].mxu0  ;;  %v4068_v59 = vpop.f32.mrb[29].mxu1 }
 0x124   : > { %v1283_v60 = vpop.f32.mrb[30].mxu0  ;;  %v1338_v62 = vpop.f32.mrb[30].mxu1 }
 0x125   : > { %v2236_v61 = vpack.c.bf16 %v1283_v60, %v1280_v56  ;;  %v4063_v63 = vpop.f32.mrb[31].mxu0  ;;  %v2237_v1 = vpack.c.bf16 %v1338_v62, %v1335_v57  ;;  %v4069_v2 = vpop.f32.mrb[31].mxu1 }
 0x126   : > { %v4698_v63 = vpop.permute.xlu1 %2828 }
 0x127   : > { %4196 = vmatprep.mubr.msk.bf16.mxu0 %vm2262_vm3, %v2236_v61  ;;  %v4696_v61 = vpop.permute.xlu0 %2824 }
 0x128   : > { %4197 = vmatmul.mubr.msk.bf16.gmra.mrb[92].mxu0 %vm2262_vm3, %v2237_v1 }
 0x12a   : > { %v1390_v3 = vpop.f32.mrb[32].mxu0  ;;  %v1445_v4 = vpop.f32.mrb[32].mxu1 }
 0x12b   : > { %v4074_v5 = vpop.f32.mrb[33].mxu0  ;;  %v4080_v6 = vpop.f32.mrb[33].mxu1 }
 0x12c   : > { %v1393_v7 = vpop.f32.mrb[34].mxu0  ;;  %v1448_v9 = vpop.f32.mrb[34].mxu1 }
 0x12d   : > { %v2238_v8 = vpack.c.bf16 %v1393_v7, %v1390_v3  ;;  %v4075_v10 = vpop.f32.mrb[35].mxu0  ;;  %v2239_v11 = vpack.c.bf16 %v1448_v9, %v1445_v4  ;;  %v4081_v12 = vpop.f32.mrb[35].mxu1 }
 0x12e   : > { %v4704_v10 = vpop.permute.xlu1 %2751 }
 0x12f   : > { %4200 = vmatprep.mubr.msk.bf16.mxu0 %vm2262_vm3, %v2238_v8  ;;  %v4702_v8 = vpop.permute.xlu0 %2747 }
 0x130   : > { %4201 = vmatmul.mubr.msk.bf16.gmra.mrb[96].mxu0 %vm2262_vm3, %v2239_v11 }
 0x132   : > { %v1500_v0 = vpop.f32.mrb[36].mxu0  ;;  %v1555_v13 = vpop.f32.mrb[36].mxu1 }
 0x133   : > { %v4086_v14 = vpop.f32.mrb[37].mxu0  ;;  %v4092_v15 = vpop.f32.mrb[37].mxu1 }
 0x134   : > { %v1503_v17 = vpop.f32.mrb[38].mxu0  ;;  %v1558_v20 = vpop.f32.mrb[38].mxu1 }
 0x135   : > { %v2240_v18 = vpack.c.bf16 %v1503_v17, %v1500_v0  ;;  %v4087_v21 = vpop.f32.mrb[39].mxu0  ;;  %v2241_v22 = vpack.c.bf16 %v1558_v20, %v1555_v13  ;;  %v4093_v23 = vpop.f32.mrb[39].mxu1 }
 0x136   : > { %v4708_v21 = vpop.permute.xlu0 %2835  ;;  %v4710_v23 = vpop.permute.xlu1 %2839 }
 0x137   : > { %4204 = vmatprep.mubr.msk.bf16.mxu1 %vm2262_vm3, %v2240_v18 }
 0x138   : > { %4205 = vmatmul.mubr.msk.bf16.vlgmr.msra.gmra.mrb[64].mxu1 %vm2262_vm3, %v2241_v22 }
 0x13a   : > { %v1610_v25 = vpop.f32.mrb[40].mxu0  ;;  %v1665_v26 = vpop.f32.mrb[40].mxu1 }
 0x13b   : > { %v4098_v27 = vpop.f32.mrb[41].mxu0  ;;  %v4104_v28 = vpop.f32.mrb[41].mxu1 }
 0x13c   : > { %v1613_v29 = vpop.f32.mrb[42].mxu0  ;;  %v1668_v31 = vpop.f32.mrb[42].mxu1 }
 0x13d   : > { %v2242_v30 = vpack.c.bf16 %v1613_v29, %v1610_v25  ;;  %v4099_v32 = vpop.f32.mrb[43].mxu0  ;;  %v2243_v33 = vpack.c.bf16 %v1668_v31, %v1665_v26  ;;  %v4105_v34 = vpop.f32.mrb[43].mxu1 }
 0x13e   : > { %v4713_v34 = vpop.permute.xlu0 %2901 }
 0x13f   : > { %4208 = vmatprep.mubr.msk.bf16.mxu1 %vm2262_vm3, %v2242_v30 }
 0x140   : > { %4209 = vmatmul.mubr.msk.bf16.gmra.mrb[68].mxu1 %vm2262_vm3, %v2243_v33 }
 0x142   : > { %v1720_v36 = vpop.f32.mrb[44].mxu0  ;;  %v1775_v38 = vpop.f32.mrb[44].mxu1 }
 0x143   : > { %v4110_v39 = vpop.f32.mrb[45].mxu0  ;;  %v4116_v40 = vpop.f32.mrb[45].mxu1 }
 0x144   : > { %v1723_v41 = vpop.f32.mrb[46].mxu0  ;;  %v1778_v44 = vpop.f32.mrb[46].mxu1 }
 0x145   : > { %v2244_v43 = vpack.c.bf16 %v1723_v41, %v1720_v36  ;;  %v4111_v45 = vpop.f32.mrb[47].mxu0  ;;  %v2245_v46 = vpack.c.bf16 %v1778_v44, %v1775_v38  ;;  %v4117_v47 = vpop.f32.mrb[47].mxu1 }
 0x146   : > { %v4716_v36 = vpop.permute.xlu1 %2905  ;;  %v4718_v38 = vpop.permute.xlu0 %2912 }
 0x147   : > { %4212 = vmatprep.mubr.msk.bf16.mxu1 %vm2262_vm3, %v2244_v43 }
 0x148   : > { %4213 = vmatmul.mubr.msk.bf16.gmra.mrb[72].mxu1 %vm2262_vm3, %v2245_v46 }
 0x14a   : > { %v1830_v49 = vpop.f32.mrb[48].mxu0  ;;  %v1885_v51 = vpop.f32.mrb[48].mxu1 }
 0x14b   : > { %v4122_v52 = vpop.f32.mrb[49].mxu0  ;;  %v4128_v53 = vpop.f32.mrb[49].mxu1 }
 0x14c   : > { %v1833_v54 = vpop.f32.mrb[50].mxu0  ;;  %v1888_v57 = vpop.f32.mrb[50].mxu1 }
 0x14d   : > { %v2246_v56 = vpack.c.bf16 %v1833_v54, %v1830_v49  ;;  %v4123_v58 = vpop.f32.mrb[51].mxu0  ;;  %v2247_v59 = vpack.c.bf16 %v1888_v57, %v1885_v51  ;;  %v4129_v60 = vpop.f32.mrb[51].mxu1 }
 0x14e   : > { %v4720_v39 = vpop.permute.xlu1 %2916  ;;  %v4722_v40 = vpop.permute.xlu0 %2989 }
 0x14f   : > { %4216 = vmatprep.mubr.msk.bf16.mxu1 %vm2262_vm3, %v2246_v56 }
 0x150   : > { %4217 = vmatmul.mubr.msk.bf16.gmra.mrb[76].mxu1 %vm2262_vm3, %v2247_v59 }
 0x152   : > { %v1940_v62 = vpop.f32.mrb[52].mxu0  ;;  %v1995_v1 = vpop.f32.mrb[52].mxu1 }
 0x153   : > { %v4134_v2 = vpop.f32.mrb[53].mxu0  ;;  %v4140_v3 = vpop.f32.mrb[53].mxu1 }
 0x154   : > { %v1943_v19 = vpop.f32.mrb[54].mxu0  ;;  %v1998_v4 = vpop.f32.mrb[54].mxu1 }
 0x155   : > { %v2248_v42 = vpack.c.bf16 %v1943_v19, %v1940_v62  ;;  %v4135_v5 = vpop.f32.mrb[55].mxu0  ;;  %v2249_v6 = vpack.c.bf16 %v1998_v4, %v1995_v1  ;;  %v4141_v7 = vpop.f32.mrb[55].mxu1 }
 0x156   : > { %v4724_v41 = vpop.permute.xlu1 %2993  ;;  %v4726_v43 = vpop.permute.xlu0 %3000 }
 0x157   : > { %4220 = vmatprep.mubr.msk.bf16.mxu1 %vm2262_vm3, %v2248_v42 }
 0x158   : > { %4221 = vmatmul.mubr.msk.bf16.gmra.mrb[80].mxu1 %vm2262_vm3, %v2249_v6  ;;  %v4777_v6 = vld [vmem:[%s5086_s4] ss:$0 sm:$0xff] }
 0x15a   : > { %v2050_v9 = vpop.f32.mrb[56].mxu0  ;;  %v2105_v11 = vpop.f32.mrb[56].mxu1 }
 0x15b   : > { %v4146_v12 = vpop.f32.mrb[57].mxu0  ;;  %v4152_v0 = vpop.f32.mrb[57].mxu1 }
 0x15c   : > { %v2053_v13 = vpop.f32.mrb[58].mxu0  ;;  %v2108_v15 = vpop.f32.mrb[58].mxu1 }
 0x15d   : > { %v2250_v14 = vpack.c.bf16 %v2053_v13, %v2050_v9  ;;  %v4147_v17 = vpop.f32.mrb[59].mxu0  ;;  %v2251_v18 = vpack.c.bf16 %v2108_v15, %v2105_v11  ;;  %v4153_v20 = vpop.f32.mrb[59].mxu1  ;;  %v4318_v13 = vld [vmem:[%s5087_s5] sm:$0xff]  }
 0x15e   : > { %v4728_v44 = vpop.permute.xlu1 %3004  ;;  %v4730_v45 = vpop.permute.xlu0 %2758  ;;  %4232 = vmatprep.subr.bf16.mxu1 %v4318_v13 }
 0x15f   : > { %4224 = vmatprep.mubr.msk.bf16.mxu1 %vm2262_vm3, %v2250_v14  ;;  %4233 = vmatpush3.bf16.msra.mxu1 %v4318_v13 }
 0x160   : > { %4225 = vmatmul.mubr.msk.bf16.gmra.mrb[84].mxu1 %vm2262_vm3, %v2251_v18 }
 0x162   : > { %v2160_v22 = vpop.f32.mrb[60].mxu0  ;;  %v2215_v25 = vpop.f32.mrb[60].mxu1 }
 0x163   : > { %v4158_v26 = vpop.f32.mrb[61].mxu0  ;;  %v4164_v27 = vpop.f32.mrb[61].mxu1 }
 0x164   : > { %v2163_v28 = vpop.f32.mrb[62].mxu0  ;;  %v2218_v30 = vpop.f32.mrb[62].mxu1 }
 0x165   : > { %v2252_v29 = vpack.c.bf16 %v2163_v28, %v2160_v22  ;;  %v4159_v31 = vpop.f32.mrb[63].mxu0  ;;  %v2253_v32 = vpack.c.bf16 %v2218_v30, %v2215_v25  ;;  %v4165_v33 = vpop.f32.mrb[63].mxu1 }
 0x166   : > { %v4732_v46 = vpop.permute.xlu1 %2762  ;;  %v4734_v47 = vpop.permute.xlu0 %2846 }
 0x167   : > { %4228 = vmatprep.mubr.msk.bf16.mxu1 %vm2262_vm3, %v2252_v29 }
 0x168   : > { %4229 = vmatmul.mubr.msk.bf16.gmra.mrb[88].mxu1 %vm2262_vm3, %v2253_v32 }
 0x16a   : > { %v4736_v49 = vpop.permute.xlu1 %2850  ;;  %v4738_v51 = vpop.permute.xlu0 %2923 }
 0x16e   : > { %v4740_v52 = vpop.permute.xlu1 %2927  ;;  %v4742_v53 = vpop.permute.xlu0 %3011 }
 0x16f   : > { %5090 = vst [vmem:[#allocation2_spill] sm:$0xff] %v4742_v53 }
 0x172   : > { %v4744_v54 = vpop.permute.xlu1 %3015  ;;  %v4746_v55 = vpop.permute.xlu0 %2769 }
 0x173   : > { %5091 = vst [vmem:[#allocation3_spill] sm:$0xff] %v4744_v54 }
 0x176   : > { %v4748_v56 = vpop.permute.xlu1 %2773  ;;  %v4750_v57 = vpop.permute.xlu0 %2857 }
 0x17a   : > { %v4752_v58 = vpop.permute.xlu1 %2861  ;;  %v4754_v59 = vpop.permute.xlu0 %2934 }
 0x17e   : > { %v4756_v60 = vpop.permute.xlu1 %2938  ;;  %v4758_v62 = vpop.permute.xlu0 %3022 }
 0x17f   : > { %5092 = vst [vmem:[#allocation4_spill] sm:$0xff] %v4758_v62 }
 0x182   : > { %v4760_v1 = vpop.permute.xlu1 %3026  ;;  %v4762_v2 = vpop.permute.xlu0 %2780 }
 0x183   : > { %5093 = vst [vmem:[#allocation5_spill] sm:$0xff] %v4760_v1 }
 0x186   : > { %v4764_v3 = vpop.permute.xlu1 %2784  ;;  %v4766_v19 = vpop.permute.xlu0 %2868 }
 0x18a   : > { %v4768_v42 = vpop.permute.xlu1 %2872  ;;  %v4770_v4 = vpop.permute.xlu0 %2945 }
 0x18e   : > { %v4772_v5 = vpop.permute.xlu1 %2949  ;;  %v4779_v7 = vpop.permute.xlu0 %3033 }
 0x18f   : > { %5094 = vst [vmem:[#allocation6_spill] sm:$0xff] %v4779_v7 }
 0x192   : > { %v4781_v9 = vpop.permute.xlu1 %3037  ;;  %v4790_v26 = vpop.permute.xlu0 %2791 }
 0x193   : > { %5095 = vst [vmem:[#allocation7_spill] sm:$0xff] %v4781_v9 }
 0x196   : > { %v4793_v29 = vpop.permute.xlu1 %2795 }
 0x1c3   : > { %v4170_v11 = vpop.f32.mrb[64].mxu0 }
 0x1c4   : > { %v2406_v12 = vadd.f32 %v4170_v11, %v4777_v6  ;;  %v2397_v0 = vpop.f32.mrb[65].mxu0 }
 0x1c5   : > { %v2398_v14 = vadd.f32 %v4777_v6, %v2397_v0  ;;  %v4171_v15 = vpop.f32.mrb[66].mxu0 }
 0x1c6   : > { %v2654_v17 = vmax.f32 %v2406_v12, 0.0  ;;  %v2409_v18 = vadd.f32 %v4171_v15, %v4777_v6  ;;  %v2400_v20 = vpop.f32.mrb[67].mxu0 }
 0x1c7   : > { %v2652_v22 = vmax.f32 %v2398_v14, 0.0  ;;  %v2401_v25 = vadd.f32 %v4777_v6, %v2400_v20  ;;  %v4804_v20 = vpop.permute.xlu0 %2879 }
 0x1c8   : > { %v3074_v27 = vmul.f32 %v4678_v16, %v2654_v17  ;;  %v2655_v28 = vmax.f32 %v2409_v18, 0.0 }
 0x1c9   : > { %v3072_v30 = vmul.f32 %v4676_v24, %v2652_v22  ;;  %v2653_v31 = vmax.f32 %v2401_v25, 0.0 }
 0x1ca   : > { %v3075_v32 = vmul.f32 %v4684_v37, %v2655_v28  ;;  %v3146_v12 = vsel %vm3136_vm4, %v3074_v27, 0.0  ;;  %v4807_v27 = vpop.permute.xlu1 %2883 }
 0x1cb   : > { %v3073_v33 = vmul.f32 %v4682_v35, %v2653_v31  ;;  %v4174_v11 = vpop.f32.mrb[68].mxu0  ;;  %v3137_v16 = vsel %vm3136_vm4, %v3072_v30, 0.0 }
 0x1cc   : > { %v3147_v0 = vsel %vm3136_vm4, %v3075_v32, 0.0  ;;  %v2422_v13 = vadd.f32 %v4174_v11, %v4777_v6  ;;  %v2413_v14 = vpop.f32.mrb[69].mxu0 }
 0x1cd   : > { %v3148_v15 = vadd.f32 %v3147_v0, %v3146_v12  ;;  %v3138_v17 = vsel %vm3136_vm4, %v3073_v33, 0.0  ;;  %v2414_v24 = vadd.f32 %v4777_v6, %v2413_v14  ;;  %v4175_v18 = vpop.f32.mrb[70].mxu0 }
 0x1ce   : > { %v3139_v37 = vadd.f32 %v3138_v17, %v3137_v16  ;;  %v2658_v35 = vmax.f32 %v2422_v13, 0.0  ;;  %v2425_v22 = vadd.f32 %v4175_v18, %v4777_v6  ;;  %v2416_v25 = vpop.f32.mrb[71].mxu0 }
 0x1cf   : > { %v3149_v28 = vrot.slane %v3148_v15, 4  ;;  %v2656_v31 = vmax.f32 %v2414_v24, 0.0  ;;  %v2417_v32 = vadd.f32 %v4777_v6, %v2416_v25  ;;  %v4815_v24 = vpop.permute.xlu0 %2956 }
 0x1d0   : > { %v3140_v30 = vrot.slane %v3139_v37, 4  ;;  %v3078_v11 = vmul.f32 %v4730_v45, %v2658_v35  ;;  %v2659_v33 = vmax.f32 %v2425_v22, 0.0  ;;  %v4820_v35 = vpop.permute.xlu1 %2960 }
 0x1d1   : > { %v3150_v12 = vadd.f32 %v3149_v28, %v3148_v15  ;;  %v3076_v0 = vmul.f32 %v4702_v8, %v2656_v31  ;;  %v2657_v14 = vmax.f32 %v2417_v32, 0.0 }
 0x1d2   : > { %v3141_v9 = vadd.f32 %v3140_v30, %v3139_v37  ;;  %v3079_v13 = vmul.f32 %v4732_v46, %v2659_v33  ;;  %v3164_v17 = vsel %vm3136_vm4, %v3078_v11, 0.0 }
 0x1d3   : > { %v3151_v16 = vrot.slane %v3150_v12, 2  ;;  %v3077_v18 = vmul.f32 %v4704_v10, %v2657_v14  ;;  %v4178_v7 = vpop.f32.mrb[72].mxu0  ;;  %v3155_v54 = vsel %vm3136_vm4, %v3076_v0, 0.0 }
 0x1d4   : > { %v3142_v25 = vrot.slane %v3141_v9, 2  ;;  %v3165_v45 = vsel %vm3136_vm4, %v3079_v13, 0.0  ;;  %v2438_v15 = vadd.f32 %v4178_v7, %v4777_v6  ;;  %v2429_v8 = vpop.f32.mrb[73].mxu0 }
 0x1d5   : > { %v3152_v37 = vadd.f32 %v3151_v16, %v3150_v12  ;;  %v3166_v46 = vadd.f32 %v3165_v45, %v3164_v17  ;;  %v3156_v22 = vsel %vm3136_vm4, %v3077_v18, 0.0  ;;  %v2430_v10 = vadd.f32 %v4777_v6, %v2429_v8  ;;  %v4179_v28 = vpop.f32.mrb[74].mxu0 }
 0x1d6   : > { %v3143_v31 = vadd.f32 %v3142_v25, %v3141_v9  ;;  %v3157_v32 = vadd.f32 %v3156_v22, %v3155_v54  ;;  %v2662_v30 = vmax.f32 %v2438_v15, 0.0  ;;  %v2441_v11 = vadd.f32 %v4179_v28, %v4777_v6  ;;  %v2432_v33 = vpop.f32.mrb[75].mxu0  ;;  %v4828_v54 = vpop.permute.xlu0 %3044 }
 0x1d7   : > { %v3153_v0 = vrot.slane %v3152_v37, 1  ;;  %v3167_v14 = vrot.slane %v3166_v46, 4  ;;  %v2660_v7 = vmax.f32 %v2430_v10, 0.0  ;;  %v2433_v13 = vadd.f32 %v4777_v6, %v2432_v33  ;;  %5096 = vst [vmem:[#allocation8_spill] sm:$0xff] %v4828_v54  ;;  %v4832_v28 = vpop.permute.xlu1 %3048 }
 0x1d8   : > { %v3144_v1 = vrot.slane %v3143_v31, 1  ;;  %v3158_v12 = vrot.slane %v3157_v32, 4  ;;  %v3082_v16 = vmul.f32 %v4762_v2, %v2662_v30  ;;  %v2663_v17 = vmax.f32 %v2441_v11, 0.0  ;;  %5097 = vst [vmem:[#allocation9_spill] sm:$0xff] %v4832_v28 }
 0x1d9   : > { %v3154_v18 = vadd.f32 %v3153_v0, %v3152_v37  ;;  %v3168_v45 = vadd.f32 %v3167_v14, %v3166_v46  ;;  %v3080_v8 = vmul.f32 %v4746_v55, %v2660_v7  ;;  %v2661_v9 = vmax.f32 %v2433_v13, 0.0 }
 0x1da   : > { %v3145_v25 = vadd.f32 %v3144_v1, %v3143_v31  ;;  %v3159_v15 = vadd.f32 %v3158_v12, %v3157_v32  ;;  %v3182_v22 = vsel %vm3136_vm4, %v3082_v16, 0.0  ;;  %v3083_v10 = vmul.f32 %v4764_v3, %v2663_v17 }
 0x1db   : > { %v3426_v33 = vpack.c.bf16 %v3154_v18, %v3154_v18  ;;  %v3169_v53 = vrot.slane %v3168_v45, 2  ;;  %v3173_v2 = vsel %vm3136_vm4, %v3080_v8, 0.0  ;;  %v3081_v37 = vmul.f32 %v4748_v56, %v2661_v9  ;;  %v4182_v46 = vpop.f32.mrb[76].mxu0 }
 0x1dc   : > { %v3425_v30 = vpack.c.bf16 %v3145_v25, %v3145_v25  ;;  %v3160_v55 = vrot.slane %v3159_v15, 2  ;;  %v3183_v11 = vsel %vm3136_vm4, %v3083_v10, 0.0  ;;  %v2454_v1 = vadd.f32 %v4182_v46, %v4777_v6  ;;  %v2445_v31 = vpop.f32.mrb[77].mxu0  ;;  %v2803_v10 = vpop.permute.xlu0 %2802 }
 0x1dd   : > { %v3501_v32 = vunpack.c.l.b16 %v3426_v33  ;;  %v3170_v0 = vadd.f32 %v3169_v53, %v3168_v45  ;;  %v3184_v3 = vadd.f32 %v3183_v11, %v3182_v22  ;;  %v3174_v14 = vsel %vm3136_vm4, %v3081_v37, 0.0  ;;  %v4183_v7 = vpop.f32.mrb[78].mxu0  ;;  %v2807_v37 = vpop.permute.xlu1 %2806 }
 0x1de   : > { %v3500_v13 = vunpack.c.l.b16 %v3425_v30  ;;  %v3161_v12 = vadd.f32 %v3160_v55, %v3159_v15  ;;  %v3175_v16 = vadd.f32 %v3174_v14, %v3173_v2  ;;  %v2666_v17 = vmax.f32 %v2454_v1, 0.0  ;;  %v2448_v56 = vpop.f32.mrb[79].mxu0 }
 0x1df   : > { %v3171_v18 = vrot.slane %v3170_v0, 1  ;;  %v3185_v8 = vrot.slane %v3184_v3, 4  ;;  %v2446_v9 = vadd.f32 %v4777_v6, %v2445_v31  ;;  %v2457_v25 = vadd.f32 %v4183_v7, %v4777_v6  ;;  %v4319_v31 = vld [vmem:[%s5087_s5 + $0x8] sm:$0xff]  }
 0x1e0   : > { %v3533_v33 = vsel %vm3532_vm5, %v3501_v32, %v3500_v13  ;;  %v3162_v53 = vrot.slane %v3161_v12, 1  ;;  %v3176_v45 = vrot.slane %v3175_v16, 4  ;;  %v2449_v22 = vadd.f32 %v4777_v6, %v2448_v56  ;;  %4234 = vmatprep.subr.bf16.mxu1 %v4319_v31 }
 0x1e1   : > { %v3172_v46 = vadd.f32 %v3171_v18, %v3170_v0  ;;  %v3186_v30 = vadd.f32 %v3185_v8, %v3184_v3  ;;  %v2664_v15 = vmax.f32 %v2446_v9, 0.0  ;;  %v2667_v2 = vmax.f32 %v2457_v25, 0.0  ;;  %4235 = vmatpush3.bf16.msra.mxu1 %v4319_v31 }
 0x1e2   : > { %v3163_v55 = vadd.f32 %v3162_v53, %v3161_v12  ;;  %v3177_v11 = vadd.f32 %v3176_v45, %v3175_v16  ;;  %v2665_v1 = vmax.f32 %v2449_v22, 0.0  ;;  %v3086_v14 = vmul.f32 %v2803_v10, %v2666_v17 }
 0x1e3   : > { %v3428_v7 = vpack.c.bf16 %v3172_v46, %v3172_v46  ;;  %v3187_v28 = vrot.slane %v3186_v30, 2  ;;  %v3084_v32 = vmul.f32 %v4790_v26, %v2664_v15  ;;  %v3087_v13 = vmul.f32 %v2807_v37, %v2667_v2  ;;  %v4186_v54 = vpop.f32.mrb[80].mxu0 }
 0x1e4   : > { %v3427_v56 = vpack.c.bf16 %v3163_v55, %v3163_v55  ;;  %v3178_v62 = vrot.slane %v3177_v11, 2  ;;  %v3085_v0 = vmul.f32 %v4793_v29, %v2665_v1  ;;  %v3200_v3 = vsel %vm3136_vm4, %v3086_v14, 0.0  ;;  %v2461_v12 = vpop.f32.mrb[81].mxu0 }
 0x1e5   : > { %v4849_v16 = vunpack.c.l.b16 %v3428_v7  ;;  %v3188_v17 = vadd.f32 %v3187_v28, %v3186_v30  ;;  %v3191_v18 = vsel %vm3136_vm4, %v3084_v32, 0.0  ;;  %v3201_v8 = vsel %vm3136_vm4, %v3087_v13, 0.0  ;;  %v4187_v9 = vpop.f32.mrb[82].mxu0 }
 0x1e6   : > { %v3502_v26 = vunpack.c.l.b16 %v3427_v56  ;;  %v3179_v25 = vadd.f32 %v3178_v62, %v3177_v11  ;;  %v3192_v10 = vsel %vm3136_vm4, %v3085_v0, 0.0  ;;  %v3202_v53 = vadd.f32 %v3201_v8, %v3200_v3  ;;  %v2464_v45 = vpop.f32.mrb[83].mxu0 }
 0x1e7   : > { %v3189_v29 = vrot.slane %v3188_v17, 1  ;;  %v3193_v22 = vadd.f32 %v3192_v10, %v3191_v18  ;;  %v2470_v37 = vadd.f32 %v4186_v54, %v4777_v6  ;;  %v2462_v46 = vadd.f32 %v4777_v6, %v2461_v12 }
 0x1e8   : > { %v4857_v28 = vsel %vm3534_vm6, %v3502_v26, %v3533_v33  ;;  %v3180_v30 = vrot.slane %v3179_v25, 1  ;;  %v3203_v15 = vrot.slane %v3202_v53, 4  ;;  %v2473_v2 = vadd.f32 %v4187_v9, %v4777_v6 }
 0x1e9   : > { %v3190_v55 = vadd.f32 %v3189_v29, %v3188_v17  ;;  %v3194_v1 = vrot.slane %v3193_v22, 4  ;;  %v2670_v62 = vmax.f32 %v2470_v37, 0.0  ;;  %v2668_v11 = vmax.f32 %v2462_v46, 0.0 }
 0x1ea   : > { %v3181_v14 = vadd.f32 %v3180_v30, %v3179_v25  ;;  %v3204_v31 = vadd.f32 %v3203_v15, %v3202_v53  ;;  %v2671_v7 = vmax.f32 %v2473_v2, 0.0  ;;  %v2465_v32 = vadd.f32 %v4777_v6, %v2464_v45 }
 0x1eb   : > { %v3430_v13 = vpack.c.bf16 %v3190_v55, %v3190_v55  ;;  %v3195_v54 = vadd.f32 %v3194_v1, %v3193_v22  ;;  %v3090_v56 = vmul.f32 %v4696_v61, %v2670_v62  ;;  %v3088_v33 = vmul.f32 %v4688_v48, %v2668_v11  ;;  %v4190_v0 = vpop.f32.mrb[84].mxu0 }
 0x1ec   : > { %v3429_v3 = vpack.c.bf16 %v3181_v14, %v3181_v14  ;;  %v3205_v12 = vrot.slane %v3204_v31, 2  ;;  %v3091_v18 = vmul.f32 %v4698_v63, %v2671_v7  ;;  %v2669_v17 = vmax.f32 %v2465_v32, 0.0  ;;  %v2477_v8 = vpop.f32.mrb[85].mxu0 }
 0x1ed   : > { %v4864_v9 = vunpack.c.l.b16 %v3430_v13  ;;  %v3196_v26 = vrot.slane %v3195_v54, 2  ;;  %v3218_v25 = vsel %vm3136_vm4, %v3090_v56, 0.0  ;;  %v3209_v10 = vsel %vm3136_vm4, %v3088_v33, 0.0  ;;  %v4191_v53 = vpop.f32.mrb[86].mxu0 }
 0x1ee   : > { %v4868_v45 = vunpack.c.l.b16 %v3429_v3  ;;  %v3206_v61 = vadd.f32 %v3205_v12, %v3204_v31  ;;  %v3219_v48 = vsel %vm3136_vm4, %v3091_v18, 0.0  ;;  %v3089_v29 = vmul.f32 %v4690_v50, %v2669_v17  ;;  %v2480_v22 = vpop.f32.mrb[87].mxu0 }
 0x1ef   : > { %v3197_v37 = vadd.f32 %v3196_v26, %v3195_v54  ;;  %v3220_v63 = vadd.f32 %v3219_v48, %v3218_v25  ;;  %v2486_v46 = vadd.f32 %v4190_v0, %v4777_v6  ;;  %v2478_v30 = vadd.f32 %v4777_v6, %v2477_v8 }
 0x1f0   : > { %v3207_v15 = vrot.slane %v3206_v61, 1  ;;  %v3210_v2 = vsel %vm3136_vm4, %v3089_v29, 0.0  ;;  %v2489_v55 = vadd.f32 %v4191_v53, %v4777_v6  ;;  %v2481_v1 = vadd.f32 %v4777_v6, %v2480_v22 }
 0x1f1   : > { %v3198_v62 = vrot.slane %v3197_v37, 1  ;;  %v3221_v11 = vrot.slane %v3220_v63, 4  ;;  %v3211_v14 = vadd.f32 %v3210_v2, %v3209_v10  ;;  %v2674_v31 = vmax.f32 %v2486_v46, 0.0 }
 0x1f2   : > { %v3208_v7 = vadd.f32 %v3207_v15, %v3206_v61  ;;  %v2672_v50 = vmax.f32 %v2478_v30, 0.0  ;;  %v2675_v32 = vmax.f32 %v2489_v55, 0.0  ;;  %v2673_v13 = vmax.f32 %v2481_v1, 0.0 }
 0x1f3   : > { %v3199_v54 = vadd.f32 %v3198_v62, %v3197_v37  ;;  %v3222_v56 = vadd.f32 %v3221_v11, %v3220_v63  ;;  %v3212_v33 = vrot.slane %v3211_v14, 4  ;;  %v3094_v0 = vmul.f32 %v4734_v47, %v2674_v31  ;;  %v4194_v3 = vpop.f32.mrb[88].mxu0 }
 0x1f4   : > { %v3432_v12 = vpack.c.bf16 %v3208_v7, %v3208_v7  ;;  %v3092_v18 = vmul.f32 %v4708_v21, %v2672_v50  ;;  %v3095_v17 = vmul.f32 %v4736_v49, %v2675_v32  ;;  %v3093_v8 = vmul.f32 %v4710_v23, %v2673_v13  ;;  %v2493_v26 = vpop.f32.mrb[89].mxu0 }
 0x1f5   : > { %v3431_v25 = vpack.c.bf16 %v3199_v54, %v3199_v54  ;;  %v3223_v10 = vrot.slane %v3222_v56, 2  ;;  %v3213_v53 = vadd.f32 %v3212_v33, %v3211_v14  ;;  %v3236_v61 = vsel %vm3136_vm4, %v3094_v0, 0.0  ;;  %v4195_v48 = vpop.f32.mrb[90].mxu0 }
 0x1f6   : > { %v4882_v29 = vunpack.c.l.b16 %v3432_v12  ;;  %v3227_v22 = vsel %vm3136_vm4, %v3092_v18, 0.0  ;;  %v3237_v47 = vsel %vm3136_vm4, %v3095_v17, 0.0  ;;  %v3228_v37 = vsel %vm3136_vm4, %v3093_v8, 0.0  ;;  %v2496_v21 = vpop.f32.mrb[91].mxu0 }
 0x1f7   : > { %v4887_v63 = vunpack.c.l.b16 %v3431_v25  ;;  %v3224_v49 = vadd.f32 %v3223_v10, %v3222_v56  ;;  %v3214_v23 = vrot.slane %v3213_v53, 2  ;;  %v3238_v46 = vadd.f32 %v3237_v47, %v3236_v61 }
 0x1f8   : > { %v3229_v30 = vadd.f32 %v3228_v37, %v3227_v22  ;;  %v2502_v15 = vadd.f32 %v4194_v3, %v4777_v6  ;;  %v2494_v2 = vadd.f32 %v4777_v6, %v2493_v26  ;;  %v2505_v55 = vadd.f32 %v4195_v48, %v4777_v6 }
 0x1f9   : > { %v3225_v1 = vrot.slane %v3224_v49, 1  ;;  %v3215_v62 = vadd.f32 %v3214_v23, %v3213_v53  ;;  %v3239_v11 = vrot.slane %v3238_v46, 4  ;;  %v2497_v14 = vadd.f32 %v4777_v6, %v2496_v21 }
 0x1fa   : > { %v3230_v31 = vrot.slane %v3229_v30, 4  ;;  %v2678_v7 = vmax.f32 %v2502_v15, 0.0  ;;  %v2676_v50 = vmax.f32 %v2494_v2, 0.0  ;;  %v2679_v32 = vmax.f32 %v2505_v55, 0.0 }
 0x1fb   : > { %v3226_v13 = vadd.f32 %v3225_v1, %v3224_v49  ;;  %v3216_v54 = vrot.slane %v3215_v62, 1  ;;  %v3240_v56 = vadd.f32 %v3239_v11, %v3238_v46  ;;  %v2677_v33 = vmax.f32 %v2497_v14, 0.0  ;;  %v4198_v0 = vpop.f32.mrb[92].mxu0 }
 0x1fc   : > { %v3231_v12 = vadd.f32 %v3230_v31, %v3229_v30  ;;  %v3098_v3 = vmul.f32 %v4766_v19, %v2678_v7  ;;  %v3096_v18 = vmul.f32 %v4750_v57, %v2676_v50  ;;  %v3099_v17 = vmul.f32 %v4768_v42, %v2679_v32  ;;  %v2509_v8 = vpop.f32.mrb[93].mxu0  ;;  %v2891_v7 = vpop.permute.xlu0 %2890 }
 0x1fd   : > { %v3434_v26 = vpack.c.bf16 %v3226_v13, %v3226_v13  ;;  %v3217_v25 = vadd.f32 %v3216_v54, %v3215_v62  ;;  %v3241_v10 = vrot.slane %v3240_v56, 2  ;;  %v3097_v53 = vmul.f32 %v4752_v58, %v2677_v33  ;;  %v4199_v61 = vpop.f32.mrb[94].mxu0 }
 0x1fe   : > { %v3232_v48 = vrot.slane %v3231_v12, 2  ;;  %v3254_v22 = vsel %vm3136_vm4, %v3098_v3, 0.0  ;;  %v3245_v47 = vsel %vm3136_vm4, %v3096_v18, 0.0  ;;  %v3255_v37 = vsel %vm3136_vm4, %v3099_v17, 0.0  ;;  %v2512_v21 = vpop.f32.mrb[95].mxu0 }
 0x1ff   : > { %v3509_v19 = vunpack.c.l.b16 %v3434_v26  ;;  %v3433_v49 = vpack.c.bf16 %v3217_v25, %v3217_v25  ;;  %v3242_v57 = vadd.f32 %v3241_v10, %v3240_v56  ;;  %v3256_v23 = vadd.f32 %v3255_v37, %v3254_v22  ;;  %v2895_v56 = vpop.permute.xlu1 %2894 }
 0x200   : > { %v3233_v42 = vadd.f32 %v3232_v48, %v3231_v12  ;;  %v3246_v46 = vsel %vm3136_vm4, %v3097_v53, 0.0  ;;  %v2518_v30 = vadd.f32 %v4198_v0, %v4777_v6  ;;  %v2510_v58 = vadd.f32 %v4777_v6, %v2509_v8 }
 0x201   : > { %v3508_v15 = vunpack.c.l.b16 %v3433_v49  ;;  %v3243_v2 = vrot.slane %v3242_v57, 1  ;;  %v3257_v55 = vrot.slane %v3256_v23, 4  ;;  %v3247_v1 = vadd.f32 %v3246_v46, %v3245_v47 }
 0x202   : > { %v3234_v62 = vrot.slane %v3233_v42, 1  ;;  %v2682_v11 = vmax.f32 %v2518_v30, 0.0  ;;  %v2680_v14 = vmax.f32 %v2510_v58, 0.0  ;;  %v2521_v31 = vadd.f32 %v4199_v61, %v4777_v6 }
 0x203   : > { %v3546_v50 = vsel %vm3532_vm5, %v3509_v19, %v3508_v15  ;;  %v3244_v32 = vadd.f32 %v3243_v2, %v3242_v57  ;;  %v3258_v13 = vadd.f32 %v3257_v55, %v3256_v23  ;;  %v3248_v54 = vrot.slane %v3247_v1, 4  ;;  %v4202_v33 = vpop.f32.mrb[96].mxu0 }
 0x204   : > { %v3235_v0 = vadd.f32 %v3234_v62, %v3233_v42  ;;  %v3100_v12 = vmul.f32 %v4804_v20, %v2680_v14  ;;  %v2683_v3 = vmax.f32 %v2521_v31, 0.0  ;;  %v2513_v18 = vadd.f32 %v4777_v6, %v2512_v21  ;;  %v2525_v17 = vpop.f32.mrb[97].mxu0 }
 0x205   : > { %v3436_v8 = vpack.c.bf16 %v3244_v32, %v3244_v32  ;;  %v3259_v26 = vrot.slane %v3258_v13, 2  ;;  %v3249_v25 = vadd.f32 %v3248_v54, %v3247_v1  ;;  %v3102_v10 = vmul.f32 %v2891_v7, %v2682_v11  ;;  %v4203_v53 = vpop.f32.mrb[98].mxu0 }
 0x206   : > { %v3435_v61 = vpack.c.bf16 %v3235_v0, %v3235_v0  ;;  %v3263_v48 = vsel %vm3136_vm4, %v3100_v12, 0.0  ;;  %v2681_v22 = vmax.f32 %v2513_v18, 0.0  ;;  %v3103_v47 = vmul.f32 %v2895_v56, %v2683_v3  ;;  %v2528_v37 = vpop.f32.mrb[99].mxu0 }
 0x207   : > { %v4908_v19 = vunpack.c.l.b16 %v3436_v8  ;;  %v3260_v49 = vadd.f32 %v3259_v26, %v3258_v13  ;;  %v3250_v57 = vrot.slane %v3249_v25, 2  ;;  %v3272_v20 = vsel %vm3136_vm4, %v3102_v10, 0.0 }
 0x208   : > { %v3510_v23 = vunpack.c.l.b16 %v3435_v61  ;;  %v3101_v21 = vmul.f32 %v4807_v27, %v2681_v22  ;;  %v3273_v42 = vsel %vm3136_vm4, %v3103_v47, 0.0  ;;  %v2534_v46 = vadd.f32 %v4202_v33, %v4777_v6 }
 0x209   : > { %v3261_v30 = vrot.slane %v3260_v49, 1  ;;  %v3251_v58 = vadd.f32 %v3250_v57, %v3249_v25  ;;  %v3274_v15 = vadd.f32 %v3273_v42, %v3272_v20  ;;  %v2526_v2 = vadd.f32 %v4777_v6, %v2525_v17 }
 0x20a   : > { %v4916_v55 = vsel %vm3534_vm6, %v3510_v23, %v3546_v50  ;;  %v3264_v1 = vsel %vm3136_vm4, %v3101_v21, 0.0  ;;  %v2686_v62 = vmax.f32 %v2534_v46, 0.0  ;;  %v2537_v11 = vadd.f32 %v4203_v53, %v4777_v6 }
 0x20b   : > { %v3262_v14 = vadd.f32 %v3261_v30, %v3260_v49  ;;  %v3252_v31 = vrot.slane %v3251_v58, 1  ;;  %v3265_v27 = vadd.f32 %v3264_v1, %v3263_v48  ;;  %v3275_v7 = vrot.slane %v3274_v15, 4  ;;  %v4206_v32 = vpop.f32.mrb[64].mxu1 }
 0x20c   : > { %v3106_v13 = vmul.f32 %v4718_v38, %v2686_v62  ;;  %v2684_v54 = vmax.f32 %v2526_v2, 0.0  ;;  %v2687_v56 = vmax.f32 %v2537_v11, 0.0  ;;  %v2529_v33 = vadd.f32 %v4777_v6, %v2528_v37  ;;  %v2541_v0 = vpop.f32.mrb[65].mxu1 }
 0x20d   : > { %v3438_v12 = vpack.c.bf16 %v3262_v14, %v3262_v14  ;;  %v3253_v50 = vadd.f32 %v3252_v31, %v3251_v58  ;;  %v3266_v3 = vrot.slane %v3265_v27, 4  ;;  %v3276_v18 = vadd.f32 %v3275_v7, %v3274_v15  ;;  %v4207_v17 = vpop.f32.mrb[66].mxu1 }
 0x20e   : > { %v3290_v8 = vsel %vm3136_vm4, %v3106_v13, 0.0  ;;  %v3104_v26 = vmul.f32 %v4713_v34, %v2684_v54  ;;  %v3107_v25 = vmul.f32 %v4720_v39, %v2687_v56  ;;  %v2685_v10 = vmax.f32 %v2529_v33, 0.0  ;;  %v2544_v53 = vpop.f32.mrb[67].mxu1 }
 0x20f   : > { %v4925_v61 = vunpack.c.l.b16 %v3438_v12  ;;  %v3437_v38 = vpack.c.bf16 %v3253_v50, %v3253_v50  ;;  %v3267_v48 = vadd.f32 %v3266_v3, %v3265_v27  ;;  %v3277_v22 = vrot.slane %v3276_v18, 2 }
 0x210   : > { %v3281_v47 = vsel %vm3136_vm4, %v3104_v26, 0.0  ;;  %v3291_v37 = vsel %vm3136_vm4, %v3107_v25, 0.0  ;;  %v3105_v49 = vmul.f32 %v4716_v36, %v2685_v10  ;;  %v2550_v57 = vadd.f32 %v4206_v32, %v4777_v6 }
 0x211   : > { %v4931_v20 = vunpack.c.l.b16 %v3437_v38  ;;  %v3268_v34 = vrot.slane %v3267_v48, 2  ;;  %v3278_v23 = vadd.f32 %v3277_v22, %v3276_v18  ;;  %v3292_v39 = vadd.f32 %v3291_v37, %v3290_v8 }
 0x212   : > { %v3282_v21 = vsel %vm3136_vm4, %v3105_v49, 0.0  ;;  %v2690_v42 = vmax.f32 %v2550_v57, 0.0  ;;  %v2542_v46 = vadd.f32 %v4777_v6, %v2541_v0  ;;  %v2553_v30 = vadd.f32 %v4207_v17, %v4777_v6 }
 0x213   : > { %v3269_v58 = vadd.f32 %v3268_v34, %v3267_v48  ;;  %v3279_v15 = vrot.slane %v3278_v23, 1  ;;  %v3293_v2 = vrot.slane %v3292_v39, 4  ;;  %v3283_v1 = vadd.f32 %v3282_v21, %v3281_v47  ;;  %v4210_v62 = vpop.f32.mrb[68].mxu1 }
 0x214   : > { %v3110_v36 = vmul.f32 %v4754_v59, %v2690_v42  ;;  %v2688_v11 = vmax.f32 %v2542_v46, 0.0  ;;  %v2691_v14 = vmax.f32 %v2553_v30, 0.0  ;;  %v2545_v31 = vadd.f32 %v4777_v6, %v2544_v53  ;;  %v2557_v27 = vpop.f32.mrb[69].mxu1 }
 0x215   : > { %v3270_v7 = vrot.slane %v3269_v58, 1  ;;  %v3280_v32 = vadd.f32 %v3279_v15, %v3278_v23  ;;  %v3294_v13 = vadd.f32 %v3293_v2, %v3292_v39  ;;  %v3284_v54 = vrot.slane %v3283_v1, 4  ;;  %v4211_v56 = vpop.f32.mrb[70].mxu1 }
 0x216   : > { %v3308_v33 = vsel %vm3136_vm4, %v3110_v36, 0.0  ;;  %v3108_v0 = vmul.f32 %v4738_v51, %v2688_v11  ;;  %v3111_v12 = vmul.f32 %v4756_v60, %v2691_v14  ;;  %v2689_v50 = vmax.f32 %v2545_v31, 0.0  ;;  %v2560_v3 = vpop.f32.mrb[71].mxu1  ;;  %v2968_v36 = vpop.permute.xlu0 %2967 }
 0x217   : > { %v3271_v18 = vadd.f32 %v3270_v7, %v3269_v58  ;;  %v3440_v59 = vpack.c.bf16 %v3280_v32, %v3280_v32  ;;  %v3295_v17 = vrot.slane %v3294_v13, 2  ;;  %v3285_v8 = vadd.f32 %v3284_v54, %v3283_v1 }
 0x218   : > { %v3299_v26 = vsel %vm3136_vm4, %v3108_v0, 0.0  ;;  %v3309_v25 = vsel %vm3136_vm4, %v3111_v12, 0.0  ;;  %v3109_v10 = vmul.f32 %v4740_v52, %v2689_v50  ;;  %v2566_v53 = vadd.f32 %v4210_v62, %v4777_v6 }
 0x219   : > { %v3439_v38 = vpack.c.bf16 %v3271_v18, %v3271_v18  ;;  %v4945_v48 = vunpack.c.l.b16 %v3440_v59  ;;  %v3296_v51 = vadd.f32 %v3295_v17, %v3294_v13  ;;  %v3286_v22 = vrot.slane %v3285_v8, 2 }
 0x21a   : > { %v3310_v60 = vadd.f32 %v3309_v25, %v3308_v33  ;;  %v3300_v47 = vsel %vm3136_vm4, %v3109_v10, 0.0  ;;  %v2694_v37 = vmax.f32 %v2566_v53, 0.0  ;;  %v2558_v49 = vadd.f32 %v4777_v6, %v2557_v27 }
 0x21b   : > { %v4949_v57 = vunpack.c.l.b16 %v3439_v38  ;;  %v3297_v34 = vrot.slane %v3296_v51, 1  ;;  %v3287_v23 = vadd.f32 %v3286_v22, %v3285_v8  ;;  %v3301_v52 = vadd.f32 %v3300_v47, %v3299_v26  ;;  %v4214_v39 = vpop.f32.mrb[72].mxu1 }
 0x21c   : > { %v3311_v21 = vrot.slane %v3310_v60, 4  ;;  %v3114_v42 = vmul.f32 %v4815_v24, %v2694_v37  ;;  %v2692_v46 = vmax.f32 %v2558_v49, 0.0  ;;  %v2569_v30 = vadd.f32 %v4211_v56, %v4777_v6  ;;  %v2573_v58 = vpop.f32.mrb[73].mxu1  ;;  %v4956_v24 = vpop.permute.xlu1 %2971 }
 0x21d   : > { %v3298_v15 = vadd.f32 %v3297_v34, %v3296_v51  ;;  %v3288_v2 = vrot.slane %v3287_v23, 1  ;;  %v3302_v1 = vrot.slane %v3301_v52, 4  ;;  %v2561_v62 = vadd.f32 %v4777_v6, %v2560_v3  ;;  %v4215_v11 = vpop.f32.mrb[74].mxu1 }
 0x21e   : > { %v3312_v14 = vadd.f32 %v3311_v21, %v3310_v60  ;;  %v3326_v31 = vsel %vm3136_vm4, %v3114_v42, 0.0  ;;  %v3112_v27 = vmul.f32 %v4770_v4, %v2692_v46  ;;  %v2695_v7 = vmax.f32 %v2569_v30, 0.0  ;;  %v2576_v32 = vpop.f32.mrb[75].mxu1  ;;  %v4965_v60 = vpop.permute.xlu0 %3055 }
 0x21f   : > { %v3442_v13 = vpack.c.bf16 %v3298_v15, %v3298_v15  ;;  %v3289_v54 = vadd.f32 %v3288_v2, %v3287_v23  ;;  %v3303_v56 = vadd.f32 %v3302_v1, %v3301_v52  ;;  %v2693_v33 = vmax.f32 %v2561_v62, 0.0 }
 0x220   : > { %v3313_v0 = vrot.slane %v3312_v14, 2  ;;  %v3317_v12 = vsel %vm3136_vm4, %v3112_v27, 0.0  ;;  %v3115_v50 = vmul.f32 %v4820_v35, %v2695_v7  ;;  %v2582_v3 = vadd.f32 %v4214_v39, %v4777_v6  ;;  %v4970_v34 = vpop.permute.xlu1 %3059 }
 0x221   : > { %v3517_v18 = vunpack.c.l.b16 %v3442_v13  ;;  %v3441_v59 = vpack.c.bf16 %v3289_v54, %v3289_v54  ;;  %v3304_v17 = vrot.slane %v3303_v56, 2  ;;  %v3113_v4 = vmul.f32 %v4772_v5, %v2693_v33 }
 0x222   : > { %v3314_v8 = vadd.f32 %v3313_v0, %v3312_v14  ;;  %v3327_v26 = vsel %vm3136_vm4, %v3115_v50, 0.0  ;;  %v2698_v25 = vmax.f32 %v2582_v3, 0.0  ;;  %v2574_v10 = vadd.f32 %v4777_v6, %v2573_v58 }
 0x223   : > { %v3516_v53 = vunpack.c.l.b16 %v3441_v59  ;;  %v3305_v38 = vadd.f32 %v3304_v17, %v3303_v56  ;;  %v3328_v51 = vadd.f32 %v3327_v26, %v3326_v31  ;;  %v3318_v22 = vsel %vm3136_vm4, %v3113_v4, 0.0  ;;  %v4218_v35 = vpop.f32.mrb[76].mxu1  ;;  %v2979_v56 = vpop.permute.xlu0 %2978 }
 0x224   : > { %v3315_v47 = vrot.slane %v3314_v8, 1  ;;  %v3319_v37 = vadd.f32 %v3318_v22, %v3317_v12  ;;  %v2696_v49 = vmax.f32 %v2574_v10, 0.0  ;;  %v3537_v5 = vsel %vm3536_vm7, %v4849_v16, %v4857_v28  ;;  %v2589_v23 = vpop.f32.mrb[77].mxu1  ;;  %v2983_v0 = vpop.permute.xlu1 %2982 }
 0x225   : > { %v3553_v52 = vsel %vm3532_vm5, %v3517_v18, %v3516_v53  ;;  %v3306_v39 = vrot.slane %v3305_v38, 1  ;;  %v3329_v21 = vrot.slane %v3328_v51, 4  ;;  %v3539_v42 = vsel %vm3538_vm8, %v4868_v45, %v3537_v5  ;;  %v4219_v46 = vpop.f32.mrb[78].mxu1 }
 0x226   : > { %v3316_v30 = vadd.f32 %v3315_v47, %v3314_v8  ;;  %v3320_v58 = vrot.slane %v3319_v37, 4  ;;  %v3116_v15 = vmul.f32 %v2968_v36, %v2696_v49  ;;  %v3541_v2 = vsel %vm3540_vm9, %v4864_v9, %v3539_v42  ;;  %v2592_v1 = vpop.f32.mrb[79].mxu1 }
 0x227   : > { %v3307_v62 = vadd.f32 %v3306_v39, %v3305_v38  ;;  %v3330_v16 = vadd.f32 %v3329_v21, %v3328_v51  ;;  %v3543_v28 = vsel %vm3542_vm10, %v4887_v63, %v3541_v2  ;;  %v3548_v14 = vsel %vm3536_vm7, %v4908_v19, %v4916_v55 }
 0x228   : > { %v3444_v31 = vpack.c.bf16 %v3316_v30, %v3316_v30  ;;  %v3321_v27 = vadd.f32 %v3320_v58, %v3319_v37  ;;  %v3335_v45 = vsel %vm3136_vm4, %v3116_v15, 0.0  ;;  %v3545_v36 = vsel %vm3544_vm11, %v4882_v29, %v3543_v28 }
 0x229   : > { %v3443_v7 = vpack.c.bf16 %v3307_v62, %v3307_v62  ;;  %v3331_v13 = vrot.slane %v3330_v16, 2  ;;  %v3549_v9 = vsel %vm3538_vm8, %v4931_v20, %v3548_v14  ;;  %v2585_v54 = vadd.f32 %v4215_v11, %v4777_v6 }
 0x22a   : > { %v3519_v63 = vunpack.c.l.b16 %v3444_v31  ;;  %v3322_v33 = vrot.slane %v3321_v27, 2  ;;  %v3550_v19 = vsel %vm3540_vm9, %v4925_v61, %v3549_v9  ;;  %v2577_v55 = vadd.f32 %v4777_v6, %v2576_v32 }
 0x22b   : > { %v3518_v12 = vunpack.c.l.b16 %v3443_v7  ;;  %v3332_v50 = vadd.f32 %v3331_v13, %v3330_v16  ;;  %v3551_v29 = vsel %vm3542_vm10, %v4949_v57, %v3550_v19  ;;  %v2699_v3 = vmax.f32 %v2585_v54, 0.0  ;;  %v4222_v18 = vpop.f32.mrb[80].mxu1 }
 0x22c   : > { %v3323_v59 = vadd.f32 %v3322_v33, %v3321_v27  ;;  %v3552_v20 = vsel %vm3544_vm11, %v4945_v48, %v3551_v29  ;;  %v2697_v11 = vmax.f32 %v2577_v55, 0.0  ;;  %v3118_v17 = vmul.f32 %v2979_v56, %v2698_v25  ;;  %v2605_v4 = vpop.f32.mrb[81].mxu1 }
 0x22d   : > { %v3554_v8 = vsel %vm3534_vm6, %v3518_v12, %v3553_v52  ;;  %v3333_v61 = vrot.slane %v3332_v50, 1  ;;  %v3567_v26 = vpack.c.b16 %v3552_v20, %v3545_v36  ;;  %v3119_v32 = vmul.f32 %v2983_v0, %v2699_v3  ;;  %v4223_v10 = vpop.f32.mrb[82].mxu1 }
 0x22e   : > { %v3324_v53 = vrot.slane %v3323_v59, 1  ;;  %v3555_v38 = vsel %vm3536_vm7, %v3519_v63, %v3554_v8  ;;  %v3117_v57 = vmul.f32 %v4956_v24, %v2697_v11  ;;  %v3344_v51 = vsel %vm3136_vm4, %v3118_v17, 0.0  ;;  %v2608_v22 = vpop.f32.mrb[83].mxu1  ;;  %v5098_v11 = vld [vmem:[#allocation4_spill] sm:$0xff] }
 0x22f   : > { %v3334_v47 = vadd.f32 %v3333_v61, %v3332_v50  ;;  %4236 = vmatprep.mubr.msk.bf16.mxu1 %vm3136_vm4, %v3567_v26  ;;  %v3345_v48 = vsel %vm3136_vm4, %v3119_v32, 0.0  ;;  %v2598_v25 = vadd.f32 %v4218_v35, %v4777_v6  ;;  %v2590_v37 = vadd.f32 %v4777_v6, %v2589_v23 }
 0x230   : > { %v3325_v49 = vadd.f32 %v3324_v53, %v3323_v59  ;;  %v3336_v5 = vsel %vm3136_vm4, %v3117_v57, 0.0  ;;  %v3346_v52 = vadd.f32 %v3345_v48, %v3344_v51  ;;  %v2601_v39 = vadd.f32 %v4219_v46, %v4777_v6 }
 0x231   : > { %v3446_v21 = vpack.c.bf16 %v3334_v47, %v3334_v47  ;;  %v3337_v24 = vadd.f32 %v3336_v5, %v3335_v45  ;;  %v2702_v42 = vmax.f32 %v2598_v25, 0.0  ;;  %v2700_v30 = vmax.f32 %v2590_v37, 0.0 }
 0x232   : > { %v3445_v58 = vpack.c.bf16 %v3325_v49, %v3325_v49  ;;  %v3347_v15 = vrot.slane %v3346_v52, 4  ;;  %v2703_v2 = vmax.f32 %v2601_v39, 0.0  ;;  %v2593_v62 = vadd.f32 %v4777_v6, %v2592_v1  ;;  %v5014_v6 = vld [vmem:[%s5086_s4] ss:$0 sm:$0xff] }
 0x233   : > { %v3521_v16 = vunpack.c.l.b16 %v3446_v21  ;;  %v3338_v28 = vrot.slane %v3337_v24, 4  ;;  %v3122_v35 = vmul.f32 %v4726_v43, %v2702_v42  ;;  %v3120_v23 = vmul.f32 %v4722_v40, %v2700_v30  ;;  %v4226_v14 = vpop.f32.mrb[84].mxu1 }
 0x234   : > { %v3520_v31 = vunpack.c.l.b16 %v3445_v58  ;;  %v3348_v27 = vadd.f32 %v3347_v15, %v3346_v52  ;;  %v3123_v46 = vmul.f32 %v4728_v44, %v2703_v2  ;;  %v2701_v36 = vmax.f32 %v2593_v62, 0.0  ;;  %v2621_v45 = vpop.f32.mrb[85].mxu1  ;;  %v5101_v58 = vld [vmem:[#allocation3_spill] sm:$0xff] }
 0x235   : > { %v3339_v7 = vadd.f32 %v3338_v28, %v3337_v24  ;;  %v3362_v13 = vsel %vm3136_vm4, %v3122_v35, 0.0  ;;  %v3353_v9 = vsel %vm3136_vm4, %v3120_v23, 0.0  ;;  %v2614_v43 = vadd.f32 %v5014_v6, %v4222_v18  ;;  %v4227_v40 = vpop.f32.mrb[86].mxu1 }
 0x236   : > { %v3556_v1 = vsel %vm3538_vm8, %v3520_v31, %v3555_v38  ;;  %v3349_v54 = vrot.slane %v3348_v27, 2  ;;  %v3363_v44 = vsel %vm3136_vm4, %v3123_v46, 0.0  ;;  %v3121_v56 = vmul.f32 %v4724_v41, %v2701_v36  ;;  %v5020_v63 = vpop.f32.mrb[87].mxu1 }
 0x237   : > { %v3340_v33 = vrot.slane %v3339_v7, 2  ;;  %v3557_v19 = vsel %vm3540_vm9, %v3521_v16, %v3556_v1  ;;  %v3364_v55 = vadd.f32 %v3363_v44, %v3362_v13  ;;  %v2706_v0 = vmax.f32 %v2614_v43, 0.0  ;;  %v5102_v43 = vld [vmem:[#allocation8_spill] sm:$0xff] }
 0x238   : > { %v3350_v12 = vadd.f32 %v3349_v54, %v3348_v27  ;;  %v3354_v50 = vsel %vm3136_vm4, %v3121_v56, 0.0  ;;  %v2606_v29 = vadd.f32 %v5014_v6, %v2605_v4  ;;  %v2617_v3 = vadd.f32 %v5014_v6, %v4223_v10  ;;  %v5099_v4 = vld [vmem:[#allocation2_spill] sm:$0xff]  ;;  %v5100_v10 = vld [vmem:[#allocation5_spill] sm:$0xff] }
 0x239   : > { %v3341_v18 = vadd.f32 %v3340_v33, %v3339_v7  ;;  %v3365_v59 = vrot.slane %v3364_v55, 4  ;;  %v3355_v20 = vadd.f32 %v3354_v50, %v3353_v9  ;;  %v3126_v17 = vmul.f32 %v5098_v11, %v2706_v0  ;;  %v5103_v11 = vld [vmem:[#allocation6_spill] sm:$0xff] }
 0x23a   : > { %v3351_v41 = vrot.slane %v3350_v12, 1  ;;  %v2704_v8 = vmax.f32 %v2606_v29, 0.0  ;;  %v2707_v61 = vmax.f32 %v2617_v3, 0.0  ;;  %v2609_v26 = vadd.f32 %v5014_v6, %v2608_v22 }
 0x23b   : > { %v3342_v32 = vrot.slane %v3341_v18, 1  ;;  %v3366_v53 = vadd.f32 %v3365_v59, %v3364_v55  ;;  %v3356_v38 = vrot.slane %v3355_v20, 4  ;;  %v3380_v57 = vsel %vm3136_vm4, %v3126_v17, 0.0  ;;  %v4230_v51 = vpop.f32.mrb[88].mxu1 }
 0x23c   : > { %v3352_v47 = vadd.f32 %v3351_v41, %v3350_v12  ;;  %v3124_v48 = vmul.f32 %v5099_v4, %v2704_v8  ;;  %v3127_v25 = vmul.f32 %v5100_v10, %v2707_v61  ;;  %v2705_v37 = vmax.f32 %v2609_v26, 0.0  ;;  %v2637_v49 = vpop.f32.mrb[89].mxu1  ;;  %v5104_v26 = vld [vmem:[#allocation9_spill] sm:$0xff] }
 0x23d   : > { %v3343_v5 = vadd.f32 %v3342_v32, %v3341_v18  ;;  %v3367_v52 = vrot.slane %v3366_v53, 2  ;;  %v3357_v39 = vadd.f32 %v3356_v38, %v3355_v20  ;;  %v2630_v21 = vadd.f32 %v5014_v6, %v4226_v14  ;;  %v4231_v24 = vpop.f32.mrb[90].mxu1 }
 0x23e   : > { %v3448_v22 = vpack.c.bf16 %v3352_v47, %v3352_v47  ;;  %v3371_v42 = vsel %vm3136_vm4, %v3124_v48, 0.0  ;;  %v3381_v30 = vsel %vm3136_vm4, %v3127_v25, 0.0  ;;  %v3125_v15 = vmul.f32 %v5101_v58, %v2705_v37  ;;  %v2640_v2 = vpop.f32.mrb[91].mxu1  ;;  %v3071_v58 = vpop.permute.xlu1 %3070 }
 0x23f   : > { %v3447_v62 = vpack.c.bf16 %v3343_v5, %v3343_v5  ;;  %v3368_v16 = vadd.f32 %v3367_v52, %v3366_v53  ;;  %v3358_v28 = vrot.slane %v3357_v39, 2  ;;  %v3382_v35 = vadd.f32 %v3381_v30, %v3380_v57  ;;  %v5105_v5 = vld [vmem:[#allocation7_spill] sm:$0xff] }
 0x240   : > { %v3523_v23 = vunpack.c.l.b16 %v3448_v22  ;;  %v3372_v31 = vsel %vm3136_vm4, %v3125_v15, 0.0  ;;  %v2710_v27 = vmax.f32 %v2630_v21, 0.0  ;;  %v2622_v46 = vadd.f32 %v5014_v6, %v2621_v45 }
 0x241   : > { %v3522_v14 = vunpack.c.l.b16 %v3447_v62  ;;  %v3369_v36 = vrot.slane %v3368_v16, 1  ;;  %v3359_v7 = vadd.f32 %v3358_v28, %v3357_v39  ;;  %v3383_v13 = vrot.slane %v3382_v35, 4  ;;  %v3067_v39 = vpop.permute.xlu0 %3066 }
 0x242   : > { %v3373_v9 = vadd.f32 %v3372_v31, %v3371_v42  ;;  %v3130_v1 = vmul.f32 %v5102_v43, %v2710_v27  ;;  %v2708_v54 = vmax.f32 %v2622_v46, 0.0  ;;  %v2633_v44 = vadd.f32 %v5014_v6, %v4227_v40 }
 0x243   : > { %v3558_v56 = vsel %vm3542_vm10, %v3522_v14, %v3557_v19  ;;  %v3370_v33 = vadd.f32 %v3369_v36, %v3368_v16  ;;  %v3360_v55 = vrot.slane %v3359_v7, 1  ;;  %v3384_v0 = vadd.f32 %v3383_v13, %v3382_v35 }
 0x244   : > { %v5041_v12 = vsel %vm3544_vm11, %v3523_v23, %v3558_v56  ;;  %v3374_v50 = vrot.slane %v3373_v9, 4  ;;  %v3398_v45 = vsel %vm3136_vm4, %v3130_v1, 0.0  ;;  %v2711_v59 = vmax.f32 %v2633_v44, 0.0 }
 0x245   : > { %v3450_v29 = vpack.c.bf16 %v3370_v33, %v3370_v33  ;;  %v3361_v3 = vadd.f32 %v3360_v55, %v3359_v7  ;;  %v3385_v18 = vrot.slane %v3384_v0, 2  ;;  %v3128_v17 = vmul.f32 %v5103_v11, %v2708_v54 }
 0x246   : > { %v3375_v20 = vadd.f32 %v3374_v50, %v3373_v9  ;;  %v2625_v40 = vadd.f32 %v5014_v6, %v5020_v63  ;;  %v2646_v19 = vadd.f32 %v5014_v6, %v4230_v51  ;;  %v3131_v32 = vmul.f32 %v5104_v26, %v2711_v59 }
 0x247   : > { %v3525_v41 = vunpack.c.l.b16 %v3450_v29  ;;  %v3449_v8 = vpack.c.bf16 %v3361_v3, %v3361_v3  ;;  %v3386_v61 = vadd.f32 %v3385_v18, %v3384_v0  ;;  %v2638_v47 = vadd.f32 %v5014_v6, %v2637_v49 }
 0x248   : > { %v3376_v53 = vrot.slane %v3375_v20, 2  ;;  %v2709_v38 = vmax.f32 %v2625_v40, 0.0  ;;  %v2714_v57 = vmax.f32 %v2646_v19, 0.0  ;;  %v3399_v10 = vsel %vm3136_vm4, %v3131_v32, 0.0 }
 0x249   : > { %v3524_v4 = vunpack.c.l.b16 %v3449_v8  ;;  %v3387_v48 = vrot.slane %v3386_v61, 1  ;;  %v2649_v25 = vadd.f32 %v5014_v6, %v4231_v24  ;;  %v3400_v63 = vadd.f32 %v3399_v10, %v3398_v45 }
 0x24a   : > { %v3377_v37 = vadd.f32 %v3376_v53, %v3375_v20  ;;  %v3129_v51 = vmul.f32 %v5105_v5, %v2709_v38  ;;  %v2712_v52 = vmax.f32 %v2638_v47, 0.0  ;;  %v2641_v30 = vadd.f32 %v5014_v6, %v2640_v2 }
 0x24b   : > { %v3560_v21 = vsel %vm3532_vm5, %v3525_v41, %v3524_v4  ;;  %v3388_v22 = vadd.f32 %v3387_v48, %v3386_v61  ;;  %v2715_v42 = vmax.f32 %v2649_v25, 0.0  ;;  %v3389_v15 = vsel %vm3136_vm4, %v3128_v17, 0.0 }
 0x24c   : > { %v3378_v49 = vrot.slane %v3377_v37, 1  ;;  %v3401_v62 = vrot.slane %v3400_v63, 4  ;;  %v3390_v16 = vsel %vm3136_vm4, %v3129_v51, 0.0  ;;  %v3132_v28 = vmul.f32 %v4965_v60, %v2712_v52 }
 0x24d   : > { %v3391_v24 = vadd.f32 %v3390_v16, %v3389_v15  ;;  %v2713_v35 = vmax.f32 %v2641_v30, 0.0  ;;  %v3134_v23 = vmul.f32 %v3067_v39, %v2714_v57  ;;  %v3135_v46 = vmul.f32 %v3071_v58, %v2715_v42 }
 0x24e   : > { %v3379_v31 = vadd.f32 %v3378_v49, %v3377_v37  ;;  %v3402_v27 = vadd.f32 %v3401_v62, %v3400_v63  ;;  %v3452_v14 = vpack.c.bf16 %v3388_v22, %v3388_v22  ;;  %v3407_v1 = vsel %vm3136_vm4, %v3132_v28, 0.0  ;;  %v3864_v22 = vld [vmem:[%s5088_s6] ss:$0 sm:$0xff] }
 0x24f   : > { %v3392_v36 = vrot.slane %v3391_v24, 4  ;;  %v3133_v7 = vmul.f32 %v4970_v34, %v2713_v35  ;;  %v3416_v13 = vsel %vm3136_vm4, %v3134_v23, 0.0  ;;  %v3417_v9 = vsel %vm3136_vm4, %v3135_v46, 0.0 }
 0x250   : > { %v3451_v6 = vpack.c.bf16 %v3379_v31, %v3379_v31  ;;  %v3403_v2 = vrot.slane %v3402_v27, 2  ;;  %v3418_v54 = vadd.f32 %v3417_v9, %v3416_v13  ;;  %v3527_v55 = vunpack.c.l.b16 %v3452_v14 }
 0x251   : > { %v3393_v43 = vadd.f32 %v3392_v36, %v3391_v24  ;;  %v3408_v60 = vsel %vm3136_vm4, %v3133_v7, 0.0 }
 0x252   : > { %v3526_v44 = vunpack.c.l.b16 %v3451_v6  ;;  %v3404_v56 = vadd.f32 %v3403_v2, %v3402_v27  ;;  %v3409_v33 = vadd.f32 %v3408_v60, %v3407_v1  ;;  %v3419_v50 = vrot.slane %v3418_v54, 4 }
 0x253   : > { %v3394_v0 = vrot.slane %v3393_v43, 2 }
 0x254   : > { %v3561_v34 = vsel %vm3534_vm6, %v3526_v44, %v3560_v21  ;;  %v3405_v45 = vrot.slane %v3404_v56, 1  ;;  %v3410_v29 = vrot.slane %v3409_v33, 4  ;;  %v3420_v59 = vadd.f32 %v3419_v50, %v3418_v54 }
 0x255   : > { %v3395_v3 = vadd.f32 %v3394_v0, %v3393_v43  ;;  %v3562_v18 = vsel %vm3536_vm7, %v3527_v55, %v3561_v34 }
 0x256   : > { %v3406_v20 = vadd.f32 %v3405_v45, %v3404_v56  ;;  %v3411_v11 = vadd.f32 %v3410_v29, %v3409_v33  ;;  %v3421_v40 = vrot.slane %v3420_v59, 2 }
 0x257   : > { %v3396_v17 = vrot.slane %v3395_v3, 1 }
 0x258   : > { %v3412_v19 = vrot.slane %v3411_v11, 2  ;;  %v3422_v8 = vadd.f32 %v3421_v40, %v3420_v59  ;;  %v3454_v61 = vpack.c.bf16 %v3406_v20, %v3406_v20 }
 0x259   : > { %v3397_v41 = vadd.f32 %v3396_v17, %v3395_v3 }
 0x25a   : > { %v3413_v26 = vadd.f32 %v3412_v19, %v3411_v11  ;;  %v3423_v53 = vrot.slane %v3422_v8, 1  ;;  %v3529_v4 = vunpack.c.l.b16 %v3454_v61 }
 0x25b   : > { %v3453_v32 = vpack.c.bf16 %v3397_v41, %v3397_v41 }
 0x25c   : > { %v3414_v38 = vrot.slane %v3413_v26, 1  ;;  %v3424_v47 = vadd.f32 %v3423_v53, %v3422_v8 }
 0x25d   : > { %v3528_v57 = vunpack.c.l.b16 %v3453_v32 }
 0x25e   : > { %v3415_v48 = vadd.f32 %v3414_v38, %v3413_v26  ;;  %v3456_v25 = vpack.c.bf16 %v3424_v47, %v3424_v47 }
 0x25f   : > { %v3563_v10 = vsel %vm3538_vm8, %v3528_v57, %v3562_v18 }
 0x260   : > { %v3455_v37 = vpack.c.bf16 %v3415_v48, %v3415_v48  ;;  %v3564_v63 = vsel %vm3540_vm9, %v3529_v4, %v3563_v10  ;;  %v3531_v51 = vunpack.c.l.b16 %v3456_v25 }
 0x262   : > { %v3530_v5 = vunpack.c.l.b16 %v3455_v37 }
 0x264   : > { %v3565_v52 = vsel %vm3542_vm10, %v3530_v5, %v3564_v63 }
 0x265   : > { %v3566_v39 = vsel %vm3544_vm11, %v3531_v51, %v3565_v52 }
 0x266   : > { %v3568_v21 = vpack.c.b16 %v3566_v39, %v5041_v12 }
 0x268   : > { %4237 = vmatmul.mubr.msk.bf16.vlgmr.msra.gmra.mrb[92].mxu1 %vm3136_vm4, %v3568_v21 }
 0x33b   : > { %v4238_v42 = vpop.f32.mrb[92].mxu1 }
 0x33c   : > { %v3621_v30 = vpop.f32.mrb[93].mxu1  ;;  %v3630_v16 = vadd.f32 %v4238_v42, %v3864_v22 }
 0x33d   : > { %v3622_v58 = vadd.f32 %v3864_v22, %v3621_v30  ;;  %v4239_v49 = vpop.f32.mrb[94].mxu1 }
 0x33e   : > { %v3624_v15 = vpop.f32.mrb[95].mxu1  ;;  %v3633_v12 = vadd.f32 %v4239_v49, %v3864_v22  ;;  %3638 = vst [vmem:[%s330_s8 + $0x10] sm:$0xff] %v3630_v16 }
 0x33f   : > { %3636 = vst [vmem:[%s330_s8] sm:$0xff] %v3622_v58  ;;  %v3625_v62 = vadd.f32 %v3864_v22, %v3624_v15 }
 0x340   : > { %3639 = vst [vmem:[%s330_s8 + $0x18] sm:$0xff] %v3633_v12 }
 0x341   : > { %3637 = vst [vmem:[%s330_s8 + $0x8] sm:$0xff] %v3625_v62 }
 0x342 PF: > { %s17_s24 = sadd.s32 1, %s4327_s24  }
 0x343   : > { %p14_p5 = scmp.ge.s32.totalorder %s17_s24, 4  }
 0x345   :  { %16 = sbr.rel (!%p14_p5) target bundleno = 1 (0x1), region = 84 }

</bundles_post_ra>
